<compile_context>
chip_gen: v7x
topology: tpu7x:2x2x1
jax: 0.10.0
libtpu: 0.0.40
codegen_flags: <defaults>
</compile_context>

<pallas_src>
import jax
import jax.numpy as jnp
from jax import lax
from jax.experimental import pallas as pl
from jax.experimental.pallas import tpu as pltpu


def lstm_model_kernel(x_ref, w0x_ref, wbig_ref, bbig_ref,
                      fc1w_ref, fc1b_ref, fc2w_ref, fc2b_ref, out_ref):
    f32 = jnp.float32
    H = fc1w_ref.shape[0]            # hidden size
    P = wbig_ref.shape[0]            # packed state width (>= 3H, multiple of 128)
    Bp = out_ref.shape[0]            # padded batch (multiple of 8)
    T = x_ref.shape[0] // Bp

    # ---- batched layer-0 input projection for all timesteps (one MXU push).
    #      BN affine, layer-0 bias fold and the g-gate 2x scale are already in
    #      w0x; output is in the packed gate-major column layout. ----
    xproj = jnp.dot(x_ref[...], w0x_ref[...], preferred_element_type=f32)   # (T*Bp, 4P)

    # ---- loop-invariant values hoisted out of the recurrence ----
    wbig = wbig_ref[...]                                                     # (P, 4P)
    bias = jnp.broadcast_to(bbig_ref[...], (Bp, 4 * P))
    lane = lax.broadcasted_iota(jnp.int32, (Bp, P), 1)

    h = jnp.zeros((Bp, P), f32)      # lanes [l*H,(l+1)*H) hold layer-l hidden state
    c = jnp.zeros((Bp, P), f32)

    # ---- wavefront-skewed recurrence: step s -> layer0@t=s, layer1@t=s-1,
    #      layer2@t=s-2; all three cells of one step evaluated by one packed
    #      matmul + one full-width sigmoid + one tanh. ----
    for s in range(T + 2):
        gates = jnp.dot(h, wbig, preferred_element_type=f32) + bias          # (Bp, 4P)
        if s < T:                                  # layer-0 input term x_s @ W0x
            gates = gates + xproj[s * Bp:(s + 1) * Bp, :]
        sg = jax.nn.sigmoid(gates)                 # single EUP stream for all gates
        i_g = sg[:, 0:P]                           # all slices vreg-aligned
        f_g = sg[:, P:2 * P]
        g_g = 2.0 * sg[:, 2 * P:3 * P] - 1.0       # tanh via pre-scaled g columns
        o_g = sg[:, 3 * P:4 * P]
        c_cand = f_g * c + i_g * g_g
        h_cand = o_g * jnp.tanh(c_cand)

        # Layer l is live at step s iff l <= s <= l + T - 1 (a contiguous range),
        # so the prologue/epilogue mask is a single lane-range compare.
        lo = max(0, s - T + 1)
        hi = min(2, s) + 1
        if lo == 0 and hi == 3:                    # steady state: no mask needed
            h, c = h_cand, c_cand
        else:
            m = (lane >= lo * H) & (lane < hi * H)
            h = jnp.where(m, h_cand, h)
            c = jnp.where(m, c_cand, c)

    # ---- dropout (identity in eval) + FC head on layer-2's last hidden state ----
    # TODO(synk): training-mode dropout (p=0.5) is intentionally not emulated.
    h2 = h[:, 2 * H:3 * H]
    y = jnp.dot(h2, fc1w_ref[...], preferred_element_type=f32) + fc1b_ref[...]
    y = jnp.maximum(y, 0.0)
    y = jnp.dot(y, fc2w_ref[...], preferred_element_type=f32) + fc2b_ref[...]
    out_ref[...] = jax.nn.sigmoid(y)


def lstm_model_forward(x, params):
    B, T, F = x.shape
    H = params["whh0"].shape[0]
    out_size = params["fc2w"].shape[1]
    P = ((3 * H + 127) // 128) * 128      # packed state width: lane-tile aligned
    Bp = ((B + 7) // 8) * 8               # batch padded to the f32 sublane tile
    f32 = jnp.float32

    # ---- BatchNorm (eval-mode affine) folded into layer-0 input weights/bias ----
    #   (x*s + t) @ Wih0 = x @ (diag(s) Wih0) + t @ Wih0
    w0x = params["bn_scale"].reshape(F, 1) * params["wih0"]                  # (F, 4H)
    b0f = (params["b0"]
           + params["bn_shift"].reshape(1, F) @ params["wih0"]).reshape(4 * H)

    # ---- packed block-diagonal weights / bias, gate-major columns [I|F|G|O]
    #      (each P lanes wide, layer l in lanes [l*H,(l+1)*H) of each block) ----
    def place_w(dst, row_lo, layer, w4h):      # w4h: (rows, 4H), PyTorch i,f,g,o order
        rows = w4h.shape[0]
        for g in range(4):
            dst = dst.at[row_lo:row_lo + rows,
                         g * P + layer * H: g * P + (layer + 1) * H
                         ].set(w4h[:, g * H:(g + 1) * H])
        return dst

    def place_b(dst, layer, b4h):              # b4h: (4H,)
        for g in range(4):
            dst = dst.at[g * P + layer * H: g * P + (layer + 1) * H
                         ].set(b4h[g * H:(g + 1) * H])
        return dst

    wbig = jnp.zeros((P, 4 * P), f32)
    wbig = place_w(wbig, 0 * H, 0, params["whh0"])     # layer0: h0 @ Whh0
    wbig = place_w(wbig, 0 * H, 1, params["wih1"])     # layer1: h0 @ Wih1
    wbig = place_w(wbig, 1 * H, 1, params["whh1"])     #         h1 @ Whh1
    wbig = place_w(wbig, 1 * H, 2, params["wih2"])     # layer2: h1 @ Wih2
    wbig = place_w(wbig, 2 * H, 2, params["whh2"])     #         h2 @ Whh2

    w0x_big = place_w(jnp.zeros((F, 4 * P), f32), 0, 0, w0x)

    bbig = jnp.zeros((4 * P,), f32)
    bbig = place_b(bbig, 0, b0f)
    bbig = place_b(bbig, 1, params["b1"].reshape(4 * H))
    bbig = place_b(bbig, 2, params["b2"].reshape(4 * H))

    # tanh(x) = 2*sigmoid(2x) - 1: pre-scale ONLY the g-gate (block 2) columns by 2.
    gscale = jnp.ones((4 * P,), f32).at[2 * P:3 * P].set(2.0)
    wbig = wbig * gscale
    w0x_big = w0x_big * gscale
    bbig = (bbig * gscale).reshape(1, 4 * P)

    # ---- time-major input, batch padded to the 8-row sublane tile ----
    x_tm = jnp.transpose(x, (1, 0, 2))                       # (T, B, F)
    x_tm = jnp.pad(x_tm, ((0, 0), (0, Bp - B), (0, 0)))      # (T, Bp, F)
    x_tm = x_tm.reshape(T * Bp, F)

    vspec = pl.BlockSpec(memory_space=pltpu.MemorySpace.VMEM)
    out = pl.pallas_call(
        lstm_model_kernel,
        out_shape=jax.ShapeDtypeStruct((Bp, out_size), jnp.float32),
        in_specs=[vspec] * 8,
        out_specs=vspec,
    )(x_tm, w0x_big, wbig, bbig,
      params["fc1w"], params["fc1b"], params["fc2w"], params["fc2b"])
    return out[:B]


def make_params(key, input_size, hidden_size, output_size):
    """Deterministic synthetic parameters matching the nn.Module shapes.

    LSTM weights are stored pre-transposed: (in, 4H) / (H, 4H) so the kernel
    does x @ W directly on the MXU.  Biases b_ih + b_hh are pre-summed.
    """
    ks = jax.random.split(key, 20)
    H = hidden_size
    F = input_size
    bound = 1.0 / jnp.sqrt(jnp.float32(H))

    def u(k, shape, b):
        return jax.random.uniform(k, shape, jnp.float32, -b, b)

    params = {}
    # BatchNorm1d(input_size), eval mode: y = (x - mean)/sqrt(var+eps)*gamma + beta
    gamma = 1.0 + 0.1 * jax.random.normal(ks[0], (F,), jnp.float32)
    beta = 0.1 * jax.random.normal(ks[1], (F,), jnp.float32)
    running_mean = jnp.zeros((F,), jnp.float32)
    running_var = jnp.ones((F,), jnp.float32)
    eps = 1e-5
    inv_std = 1.0 / jnp.sqrt(running_var + eps)
    params["bn_scale"] = (gamma * inv_std).reshape(1, F)
    params["bn_shift"] = (beta - gamma * running_mean * inv_std).reshape(1, F)

    in_dims = [F, H, H]
    for layer in range(3):
        kk = ks[2 + 4 * layer: 2 + 4 * (layer + 1)]
        params[f"wih{layer}"] = u(kk[0], (in_dims[layer], 4 * H), bound)
        params[f"whh{layer}"] = u(kk[1], (H, 4 * H), bound)
        b_ih = u(kk[2], (4 * H,), bound)
        b_hh = u(kk[3], (4 * H,), bound)
        params[f"b{layer}"] = (b_ih + b_hh).reshape(1, 4 * H)

    b1 = 1.0 / jnp.sqrt(jnp.float32(H))
    params["fc1w"] = u(ks[14], (H, 64), b1)
    params["fc1b"] = u(ks[15], (64,), b1).reshape(1, 64)
    b2 = 1.0 / jnp.sqrt(jnp.float32(64))
    params["fc2w"] = u(ks[16], (64, output_size), b2)
    params["fc2b"] = u(ks[17], (output_size,), b2).reshape(1, output_size)
    return params


def reference_forward(x, params):
    """Pure-JAX reference mirroring the PyTorch module (eval mode)."""
    B, T, F = x.shape
    H = params["whh0"].shape[0]
    xb = x * params["bn_scale"][None] + params["bn_shift"][None]

    h = [jnp.zeros((B, H), jnp.float32) for _ in range(3)]
    c = [jnp.zeros((B, H), jnp.float32) for _ in range(3)]
    for t in range(T):
        layer_in = xb[:, t, :]
        for l in range(3):
            gates = (layer_in @ params[f"wih{l}"] + h[l] @ params[f"whh{l}"]
                     + params[f"b{l}"])
            i_g = jax.nn.sigmoid(gates[:, 0 * H:1 * H])
            f_g = jax.nn.sigmoid(gates[:, 1 * H:2 * H])
            g_g = jnp.tanh(gates[:, 2 * H:3 * H])
            o_g = jax.nn.sigmoid(gates[:, 3 * H:4 * H])
            c[l] = f_g * c[l] + i_g * g_g
            h[l] = o_g * jnp.tanh(c[l])
            layer_in = h[l]
    z = jnp.maximum(h[2] @ params["fc1w"] + params["fc1b"], 0.0)
    z = z @ params["fc2w"] + params["fc2b"]
    return jax.nn.sigmoid(z)


if __name__ == "__main__":
    B, T, F = 4, 8, 16          # batch, seq_len, input_size
    hidden_size, output_size = 32, 1

    key = jax.random.PRNGKey(0)
    kx, kp = jax.random.split(key)
    x = jax.random.normal(kx, (B, T, F), jnp.float32)
    params = make_params(kp, F, hidden_size, output_size)

    forward = jax.jit(lstm_model_forward)
    out = jax.block_until_ready(forward(x, params))

    ref = reference_forward(x, params)
    assert out.shape == (B, output_size)
    assert jnp.allclose(out, ref, atol=2e-3, rtol=2e-3), (out, ref)

    print("KERNEL_OK")
</pallas_src>

<mosaic_0001>
module attributes {stable_mosaic.version = 11 : i64} {
  func.func @lstm_model_kernel(%arg0: memref<64x16xf32, #tpu.memory_space<vmem>>, %arg1: memref<16x512xf32, #tpu.memory_space<vmem>>, %arg2: memref<128x512xf32, #tpu.memory_space<vmem>>, %arg3: memref<1x512xf32, #tpu.memory_space<vmem>>, %arg4: memref<32x64xf32, #tpu.memory_space<vmem>>, %arg5: memref<1x64xf32, #tpu.memory_space<vmem>>, %arg6: memref<64x1xf32, #tpu.memory_space<vmem>>, %arg7: memref<1x1xf32, #tpu.memory_space<vmem>>, %arg8: memref<8x1xf32, #tpu.memory_space<vmem>>) attributes {dimension_semantics = [], scalar_prefetch = 0 : i64, scratch_operands = 0 : i64, tpu.core_type = #tpu.core_type<tc>} {
    %c0 = arith.constant 0 : index
    %c0_0 = arith.constant 0 : index
    %0 = vector.load %arg0[%c0, %c0_0] : memref<64x16xf32, #tpu.memory_space<vmem>>, vector<64x16xf32>
    %c0_1 = arith.constant 0 : index
    %c0_2 = arith.constant 0 : index
    %1 = vector.load %arg1[%c0_1, %c0_2] : memref<16x512xf32, #tpu.memory_space<vmem>>, vector<16x512xf32>
    %cst = arith.constant dense<0.000000e+00> : vector<64x512xf32>
    %2 = tpu.matmul %0, %1, %cst {dimension_numbers = #tpu.dot_dimension_numbers<[1], [0], [0], [1], [0, 0, 1, 1], [], []>} : vector<64x16xf32>, vector<16x512xf32>, vector<64x512xf32> -> vector<64x512xf32>
    %c0_3 = arith.constant 0 : index
    %c0_4 = arith.constant 0 : index
    %3 = vector.load %arg2[%c0_3, %c0_4] : memref<128x512xf32, #tpu.memory_space<vmem>>, vector<128x512xf32>
    %c0_5 = arith.constant 0 : index
    %c0_6 = arith.constant 0 : index
    %4 = vector.load %arg3[%c0_5, %c0_6] : memref<1x512xf32, #tpu.memory_space<vmem>>, vector<1x512xf32>
    %5 = vector.shape_cast %4 : vector<1x512xf32> to vector<1x512xf32>
    %6 = vector.broadcast %5 : vector<1x512xf32> to vector<8x512xf32>
    %7 = tpu.iota {dimensions = array<i32: 1>} : vector<8x128xi32>
    %cst_7 = arith.constant 0.000000e+00 : f32
    %8 = vector.broadcast %cst_7 : f32 to vector<8x128xf32>
    %cst_8 = arith.constant 0.000000e+00 : f32
    %9 = vector.broadcast %cst_8 : f32 to vector<8x128xf32>
    %cst_9 = arith.constant dense<0.000000e+00> : vector<8x512xf32>
    %10 = tpu.matmul %8, %3, %cst_9 {dimension_numbers = #tpu.dot_dimension_numbers<[1], [0], [0], [1], [0, 0, 1, 1], [], []>} : vector<8x128xf32>, vector<128x512xf32>, vector<8x512xf32> -> vector<8x512xf32>
    %11 = arith.addf %10, %6 : vector<8x512xf32>
    %12 = vector.extract_strided_slice %2 {offsets = [0, 0], sizes = [8, 512], strides = [1, 1]} : vector<64x512xf32> to vector<8x512xf32>
    %13 = arith.addf %11, %12 : vector<8x512xf32>
    %14 = arith.negf %13 : vector<8x512xf32>
    %15 = math.exp %14 : vector<8x512xf32>
    %cst_10 = arith.constant 1.000000e+00 : f32
    %16 = vector.broadcast %cst_10 : f32 to vector<8x512xf32>
    %17 = arith.addf %16, %15 : vector<8x512xf32>
    %18 = arith.divf %16, %17 : vector<8x512xf32>
    %19 = vector.extract_strided_slice %18 {offsets = [0, 0], sizes = [8, 128], strides = [1, 1]} : vector<8x512xf32> to vector<8x128xf32>
    %20 = vector.extract_strided_slice %18 {offsets = [0, 128], sizes = [8, 128], strides = [1, 1]} : vector<8x512xf32> to vector<8x128xf32>
    %21 = vector.extract_strided_slice %18 {offsets = [0, 256], sizes = [8, 128], strides = [1, 1]} : vector<8x512xf32> to vector<8x128xf32>
    %cst_11 = arith.constant 2.000000e+00 : f32
    %22 = vector.broadcast %cst_11 : f32 to vector<8x128xf32>
    %23 = arith.mulf %22, %21 : vector<8x128xf32>
    %cst_12 = arith.constant 1.000000e+00 : f32
    %24 = vector.broadcast %cst_12 : f32 to vector<8x128xf32>
    %25 = arith.subf %23, %24 : vector<8x128xf32>
    %26 = vector.extract_strided_slice %18 {offsets = [0, 384], sizes = [8, 128], strides = [1, 1]} : vector<8x512xf32> to vector<8x128xf32>
    %27 = arith.mulf %20, %9 : vector<8x128xf32>
    %28 = arith.mulf %19, %25 : vector<8x128xf32>
    %29 = arith.addf %27, %28 : vector<8x128xf32>
    %30 = math.tanh %29 : vector<8x128xf32>
    %31 = arith.mulf %26, %30 : vector<8x128xf32>
    %c0_i32 = arith.constant 0 : i32
    %32 = vector.broadcast %c0_i32 : i32 to vector<8x128xi32>
    %33 = arith.cmpi sge, %7, %32 : vector<8x128xi32>
    %c32_i32 = arith.constant 32 : i32
    %34 = vector.broadcast %c32_i32 : i32 to vector<8x128xi32>
    %35 = arith.cmpi slt, %7, %34 : vector<8x128xi32>
    %36 = arith.andi %33, %35 : vector<8x128xi1>
    %37 = arith.select %36, %31, %8 : vector<8x128xi1>, vector<8x128xf32>
    %38 = arith.select %36, %29, %9 : vector<8x128xi1>, vector<8x128xf32>
    %cst_13 = arith.constant dense<0.000000e+00> : vector<8x512xf32>
    %39 = tpu.matmul %37, %3, %cst_13 {dimension_numbers = #tpu.dot_dimension_numbers<[1], [0], [0], [1], [0, 0, 1, 1], [], []>} : vector<8x128xf32>, vector<128x512xf32>, vector<8x512xf32> -> vector<8x512xf32>
    %40 = arith.addf %39, %6 : vector<8x512xf32>
    %41 = vector.extract_strided_slice %2 {offsets = [8, 0], sizes = [8, 512], strides = [1, 1]} : vector<64x512xf32> to vector<8x512xf32>
    %42 = arith.addf %40, %41 : vector<8x512xf32>
    %43 = arith.negf %42 : vector<8x512xf32>
    %44 = math.exp %43 : vector<8x512xf32>
    %cst_14 = arith.constant 1.000000e+00 : f32
    %45 = vector.broadcast %cst_14 : f32 to vector<8x512xf32>
    %46 = arith.addf %45, %44 : vector<8x512xf32>
    %47 = arith.divf %45, %46 : vector<8x512xf32>
    %48 = vector.extract_strided_slice %47 {offsets = [0, 0], sizes = [8, 128], strides = [1, 1]} : vector<8x512xf32> to vector<8x128xf32>
    %49 = vector.extract_strided_slice %47 {offsets = [0, 128], sizes = [8, 128], strides = [1, 1]} : vector<8x512xf32> to vector<8x128xf32>
    %50 = vector.extract_strided_slice %47 {offsets = [0, 256], sizes = [8, 128], strides = [1, 1]} : vector<8x512xf32> to vector<8x128xf32>
    %cst_15 = arith.constant 2.000000e+00 : f32
    %51 = vector.broadcast %cst_15 : f32 to vector<8x128xf32>
    %52 = arith.mulf %51, %50 : vector<8x128xf32>
    %cst_16 = arith.constant 1.000000e+00 : f32
    %53 = vector.broadcast %cst_16 : f32 to vector<8x128xf32>
    %54 = arith.subf %52, %53 : vector<8x128xf32>
    %55 = vector.extract_strided_slice %47 {offsets = [0, 384], sizes = [8, 128], strides = [1, 1]} : vector<8x512xf32> to vector<8x128xf32>
    %56 = arith.mulf %49, %38 : vector<8x128xf32>
    %57 = arith.mulf %48, %54 : vector<8x128xf32>
    %58 = arith.addf %56, %57 : vector<8x128xf32>
    %59 = math.tanh %58 : vector<8x128xf32>
    %60 = arith.mulf %55, %59 : vector<8x128xf32>
    %c0_i32_17 = arith.constant 0 : i32
    %61 = vector.broadcast %c0_i32_17 : i32 to vector<8x128xi32>
    %62 = arith.cmpi sge, %7, %61 : vector<8x128xi32>
    %c64_i32 = arith.constant 64 : i32
    %63 = vector.broadcast %c64_i32 : i32 to vector<8x128xi32>
    %64 = arith.cmpi slt, %7, %63 : vector<8x128xi32>
    %65 = arith.andi %62, %64 : vector<8x128xi1>
    %66 = arith.select %65, %60, %37 : vector<8x128xi1>, vector<8x128xf32>
    %67 = arith.select %65, %58, %38 : vector<8x128xi1>, vector<8x128xf32>
    %cst_18 = arith.constant dense<0.000000e+00> : vector<8x512xf32>
    %68 = tpu.matmul %66, %3, %cst_18 {dimension_numbers = #tpu.dot_dimension_numbers<[1], [0], [0], [1], [0, 0, 1, 1], [], []>} : vector<8x128xf32>, vector<128x512xf32>, vector<8x512xf32> -> vector<8x512xf32>
    %69 = arith.addf %68, %6 : vector<8x512xf32>
    %70 = vector.extract_strided_slice %2 {offsets = [16, 0], sizes = [8, 512], strides = [1, 1]} : vector<64x512xf32> to vector<8x512xf32>
    %71 = arith.addf %69, %70 : vector<8x512xf32>
    %72 = arith.negf %71 : vector<8x512xf32>
    %73 = math.exp %72 : vector<8x512xf32>
    %cst_19 = arith.constant 1.000000e+00 : f32
    %74 = vector.broadcast %cst_19 : f32 to vector<8x512xf32>
    %75 = arith.addf %74, %73 : vector<8x512xf32>
    %76 = arith.divf %74, %75 : vector<8x512xf32>
    %77 = vector.extract_strided_slice %76 {offsets = [0, 0], sizes = [8, 128], strides = [1, 1]} : vector<8x512xf32> to vector<8x128xf32>
    %78 = vector.extract_strided_slice %76 {offsets = [0, 128], sizes = [8, 128], strides = [1, 1]} : vector<8x512xf32> to vector<8x128xf32>
    %79 = vector.extract_strided_slice %76 {offsets = [0, 256], sizes = [8, 128], strides = [1, 1]} : vector<8x512xf32> to vector<8x128xf32>
    %cst_20 = arith.constant 2.000000e+00 : f32
    %80 = vector.broadcast %cst_20 : f32 to vector<8x128xf32>
    %81 = arith.mulf %80, %79 : vector<8x128xf32>
    %cst_21 = arith.constant 1.000000e+00 : f32
    %82 = vector.broadcast %cst_21 : f32 to vector<8x128xf32>
    %83 = arith.subf %81, %82 : vector<8x128xf32>
    %84 = vector.extract_strided_slice %76 {offsets = [0, 384], sizes = [8, 128], strides = [1, 1]} : vector<8x512xf32> to vector<8x128xf32>
    %85 = arith.mulf %78, %67 : vector<8x128xf32>
    %86 = arith.mulf %77, %83 : vector<8x128xf32>
    %87 = arith.addf %85, %86 : vector<8x128xf32>
    %88 = math.tanh %87 : vector<8x128xf32>
    %89 = arith.mulf %84, %88 : vector<8x128xf32>
    %cst_22 = arith.constant dense<0.000000e+00> : vector<8x512xf32>
    %90 = tpu.matmul %89, %3, %cst_22 {dimension_numbers = #tpu.dot_dimension_numbers<[1], [0], [0], [1], [0, 0, 1, 1], [], []>} : vector<8x128xf32>, vector<128x512xf32>, vector<8x512xf32> -> vector<8x512xf32>
    %91 = arith.addf %90, %6 : vector<8x512xf32>
    %92 = vector.extract_strided_slice %2 {offsets = [24, 0], sizes = [8, 512], strides = [1, 1]} : vector<64x512xf32> to vector<8x512xf32>
    %93 = arith.addf %91, %92 : vector<8x512xf32>
    %94 = arith.negf %93 : vector<8x512xf32>
    %95 = math.exp %94 : vector<8x512xf32>
    %cst_23 = arith.constant 1.000000e+00 : f32
    %96 = vector.broadcast %cst_23 : f32 to vector<8x512xf32>
    %97 = arith.addf %96, %95 : vector<8x512xf32>
    %98 = arith.divf %96, %97 : vector<8x512xf32>
    %99 = vector.extract_strided_slice %98 {offsets = [0, 0], sizes = [8, 128], strides = [1, 1]} : vector<8x512xf32> to vector<8x128xf32>
    %100 = vector.extract_strided_slice %98 {offsets = [0, 128], sizes = [8, 128], strides = [1, 1]} : vector<8x512xf32> to vector<8x128xf32>
    %101 = vector.extract_strided_slice %98 {offsets = [0, 256], sizes = [8, 128], strides = [1, 1]} : vector<8x512xf32> to vector<8x128xf32>
    %cst_24 = arith.constant 2.000000e+00 : f32
    %102 = vector.broadcast %cst_24 : f32 to vector<8x128xf32>
    %103 = arith.mulf %102, %101 : vector<8x128xf32>
    %cst_25 = arith.constant 1.000000e+00 : f32
    %104 = vector.broadcast %cst_25 : f32 to vector<8x128xf32>
    %105 = arith.subf %103, %104 : vector<8x128xf32>
    %106 = vector.extract_strided_slice %98 {offsets = [0, 384], sizes = [8, 128], strides = [1, 1]} : vector<8x512xf32> to vector<8x128xf32>
    %107 = arith.mulf %100, %87 : vector<8x128xf32>
    %108 = arith.mulf %99, %105 : vector<8x128xf32>
    %109 = arith.addf %107, %108 : vector<8x128xf32>
    %110 = math.tanh %109 : vector<8x128xf32>
    %111 = arith.mulf %106, %110 : vector<8x128xf32>
    %cst_26 = arith.constant dense<0.000000e+00> : vector<8x512xf32>
    %112 = tpu.matmul %111, %3, %cst_26 {dimension_numbers = #tpu.dot_dimension_numbers<[1], [0], [0], [1], [0, 0, 1, 1], [], []>} : vector<8x128xf32>, vector<128x512xf32>, vector<8x512xf32> -> vector<8x512xf32>
    %113 = arith.addf %112, %6 : vector<8x512xf32>
    %114 = vector.extract_strided_slice %2 {offsets = [32, 0], sizes = [8, 512], strides = [1, 1]} : vector<64x512xf32> to vector<8x512xf32>
    %115 = arith.addf %113, %114 : vector<8x512xf32>
    %116 = arith.negf %115 : vector<8x512xf32>
    %117 = math.exp %116 : vector<8x512xf32>
    %cst_27 = arith.constant 1.000000e+00 : f32
    %118 = vector.broadcast %cst_27 : f32 to vector<8x512xf32>
    %119 = arith.addf %118, %117 : vector<8x512xf32>
    %120 = arith.divf %118, %119 : vector<8x512xf32>
    %121 = vector.extract_strided_slice %120 {offsets = [0, 0], sizes = [8, 128], strides = [1, 1]} : vector<8x512xf32> to vector<8x128xf32>
    %122 = vector.extract_strided_slice %120 {offsets = [0, 128], sizes = [8, 128], strides = [1, 1]} : vector<8x512xf32> to vector<8x128xf32>
    %123 = vector.extract_strided_slice %120 {offsets = [0, 256], sizes = [8, 128], strides = [1, 1]} : vector<8x512xf32> to vector<8x128xf32>
    %cst_28 = arith.constant 2.000000e+00 : f32
    %124 = vector.broadcast %cst_28 : f32 to vector<8x128xf32>
    %125 = arith.mulf %124, %123 : vector<8x128xf32>
    %cst_29 = arith.constant 1.000000e+00 : f32
    %126 = vector.broadcast %cst_29 : f32 to vector<8x128xf32>
    %127 = arith.subf %125, %126 : vector<8x128xf32>
    %128 = vector.extract_strided_slice %120 {offsets = [0, 384], sizes = [8, 128], strides = [1, 1]} : vector<8x512xf32> to vector<8x128xf32>
    %129 = arith.mulf %122, %109 : vector<8x128xf32>
    %130 = arith.mulf %121, %127 : vector<8x128xf32>
    %131 = arith.addf %129, %130 : vector<8x128xf32>
    %132 = math.tanh %131 : vector<8x128xf32>
    %133 = arith.mulf %128, %132 : vector<8x128xf32>
    %cst_30 = arith.constant dense<0.000000e+00> : vector<8x512xf32>
    %134 = tpu.matmul %133, %3, %cst_30 {dimension_numbers = #tpu.dot_dimension_numbers<[1], [0], [0], [1], [0, 0, 1, 1], [], []>} : vector<8x128xf32>, vector<128x512xf32>, vector<8x512xf32> -> vector<8x512xf32>
    %135 = arith.addf %134, %6 : vector<8x512xf32>
    %136 = vector.extract_strided_slice %2 {offsets = [40, 0], sizes = [8, 512], strides = [1, 1]} : vector<64x512xf32> to vector<8x512xf32>
    %137 = arith.addf %135, %136 : vector<8x512xf32>
    %138 = arith.negf %137 : vector<8x512xf32>
    %139 = math.exp %138 : vector<8x512xf32>
    %cst_31 = arith.constant 1.000000e+00 : f32
    %140 = vector.broadcast %cst_31 : f32 to vector<8x512xf32>
    %141 = arith.addf %140, %139 : vector<8x512xf32>
    %142 = arith.divf %140, %141 : vector<8x512xf32>
    %143 = vector.extract_strided_slice %142 {offsets = [0, 0], sizes = [8, 128], strides = [1, 1]} : vector<8x512xf32> to vector<8x128xf32>
    %144 = vector.extract_strided_slice %142 {offsets = [0, 128], sizes = [8, 128], strides = [1, 1]} : vector<8x512xf32> to vector<8x128xf32>
    %145 = vector.extract_strided_slice %142 {offsets = [0, 256], sizes = [8, 128], strides = [1, 1]} : vector<8x512xf32> to vector<8x128xf32>
    %cst_32 = arith.constant 2.000000e+00 : f32
    %146 = vector.broadcast %cst_32 : f32 to vector<8x128xf32>
    %147 = arith.mulf %146, %145 : vector<8x128xf32>
    %cst_33 = arith.constant 1.000000e+00 : f32
    %148 = vector.broadcast %cst_33 : f32 to vector<8x128xf32>
    %149 = arith.subf %147, %148 : vector<8x128xf32>
    %150 = vector.extract_strided_slice %142 {offsets = [0, 384], sizes = [8, 128], strides = [1, 1]} : vector<8x512xf32> to vector<8x128xf32>
    %151 = arith.mulf %144, %131 : vector<8x128xf32>
    %152 = arith.mulf %143, %149 : vector<8x128xf32>
    %153 = arith.addf %151, %152 : vector<8x128xf32>
    %154 = math.tanh %153 : vector<8x128xf32>
    %155 = arith.mulf %150, %154 : vector<8x128xf32>
    %cst_34 = arith.constant dense<0.000000e+00> : vector<8x512xf32>
    %156 = tpu.matmul %155, %3, %cst_34 {dimension_numbers = #tpu.dot_dimension_numbers<[1], [0], [0], [1], [0, 0, 1, 1], [], []>} : vector<8x128xf32>, vector<128x512xf32>, vector<8x512xf32> -> vector<8x512xf32>
    %157 = arith.addf %156, %6 : vector<8x512xf32>
    %158 = vector.extract_strided_slice %2 {offsets = [48, 0], sizes = [8, 512], strides = [1, 1]} : vector<64x512xf32> to vector<8x512xf32>
    %159 = arith.addf %157, %158 : vector<8x512xf32>
    %160 = arith.negf %159 : vector<8x512xf32>
    %161 = math.exp %160 : vector<8x512xf32>
    %cst_35 = arith.constant 1.000000e+00 : f32
    %162 = vector.broadcast %cst_35 : f32 to vector<8x512xf32>
    %163 = arith.addf %162, %161 : vector<8x512xf32>
    %164 = arith.divf %162, %163 : vector<8x512xf32>
    %165 = vector.extract_strided_slice %164 {offsets = [0, 0], sizes = [8, 128], strides = [1, 1]} : vector<8x512xf32> to vector<8x128xf32>
    %166 = vector.extract_strided_slice %164 {offsets = [0, 128], sizes = [8, 128], strides = [1, 1]} : vector<8x512xf32> to vector<8x128xf32>
    %167 = vector.extract_strided_slice %164 {offsets = [0, 256], sizes = [8, 128], strides = [1, 1]} : vector<8x512xf32> to vector<8x128xf32>
    %cst_36 = arith.constant 2.000000e+00 : f32
    %168 = vector.broadcast %cst_36 : f32 to vector<8x128xf32>
    %169 = arith.mulf %168, %167 : vector<8x128xf32>
    %cst_37 = arith.constant 1.000000e+00 : f32
    %170 = vector.broadcast %cst_37 : f32 to vector<8x128xf32>
    %171 = arith.subf %169, %170 : vector<8x128xf32>
    %172 = vector.extract_strided_slice %164 {offsets = [0, 384], sizes = [8, 128], strides = [1, 1]} : vector<8x512xf32> to vector<8x128xf32>
    %173 = arith.mulf %166, %153 : vector<8x128xf32>
    %174 = arith.mulf %165, %171 : vector<8x128xf32>
    %175 = arith.addf %173, %174 : vector<8x128xf32>
    %176 = math.tanh %175 : vector<8x128xf32>
    %177 = arith.mulf %172, %176 : vector<8x128xf32>
    %cst_38 = arith.constant dense<0.000000e+00> : vector<8x512xf32>
    %178 = tpu.matmul %177, %3, %cst_38 {dimension_numbers = #tpu.dot_dimension_numbers<[1], [0], [0], [1], [0, 0, 1, 1], [], []>} : vector<8x128xf32>, vector<128x512xf32>, vector<8x512xf32> -> vector<8x512xf32>
    %179 = arith.addf %178, %6 : vector<8x512xf32>
    %180 = vector.extract_strided_slice %2 {offsets = [56, 0], sizes = [8, 512], strides = [1, 1]} : vector<64x512xf32> to vector<8x512xf32>
    %181 = arith.addf %179, %180 : vector<8x512xf32>
    %182 = arith.negf %181 : vector<8x512xf32>
    %183 = math.exp %182 : vector<8x512xf32>
    %cst_39 = arith.constant 1.000000e+00 : f32
    %184 = vector.broadcast %cst_39 : f32 to vector<8x512xf32>
    %185 = arith.addf %184, %183 : vector<8x512xf32>
    %186 = arith.divf %184, %185 : vector<8x512xf32>
    %187 = vector.extract_strided_slice %186 {offsets = [0, 0], sizes = [8, 128], strides = [1, 1]} : vector<8x512xf32> to vector<8x128xf32>
    %188 = vector.extract_strided_slice %186 {offsets = [0, 128], sizes = [8, 128], strides = [1, 1]} : vector<8x512xf32> to vector<8x128xf32>
    %189 = vector.extract_strided_slice %186 {offsets = [0, 256], sizes = [8, 128], strides = [1, 1]} : vector<8x512xf32> to vector<8x128xf32>
    %cst_40 = arith.constant 2.000000e+00 : f32
    %190 = vector.broadcast %cst_40 : f32 to vector<8x128xf32>
    %191 = arith.mulf %190, %189 : vector<8x128xf32>
    %cst_41 = arith.constant 1.000000e+00 : f32
    %192 = vector.broadcast %cst_41 : f32 to vector<8x128xf32>
    %193 = arith.subf %191, %192 : vector<8x128xf32>
    %194 = vector.extract_strided_slice %186 {offsets = [0, 384], sizes = [8, 128], strides = [1, 1]} : vector<8x512xf32> to vector<8x128xf32>
    %195 = arith.mulf %188, %175 : vector<8x128xf32>
    %196 = arith.mulf %187, %193 : vector<8x128xf32>
    %197 = arith.addf %195, %196 : vector<8x128xf32>
    %198 = math.tanh %197 : vector<8x128xf32>
    %199 = arith.mulf %194, %198 : vector<8x128xf32>
    %cst_42 = arith.constant dense<0.000000e+00> : vector<8x512xf32>
    %200 = tpu.matmul %199, %3, %cst_42 {dimension_numbers = #tpu.dot_dimension_numbers<[1], [0], [0], [1], [0, 0, 1, 1], [], []>} : vector<8x128xf32>, vector<128x512xf32>, vector<8x512xf32> -> vector<8x512xf32>
    %201 = arith.addf %200, %6 : vector<8x512xf32>
    %202 = arith.negf %201 : vector<8x512xf32>
    %203 = math.exp %202 : vector<8x512xf32>
    %cst_43 = arith.constant 1.000000e+00 : f32
    %204 = vector.broadcast %cst_43 : f32 to vector<8x512xf32>
    %205 = arith.addf %204, %203 : vector<8x512xf32>
    %206 = arith.divf %204, %205 : vector<8x512xf32>
    %207 = vector.extract_strided_slice %206 {offsets = [0, 0], sizes = [8, 128], strides = [1, 1]} : vector<8x512xf32> to vector<8x128xf32>
    %208 = vector.extract_strided_slice %206 {offsets = [0, 128], sizes = [8, 128], strides = [1, 1]} : vector<8x512xf32> to vector<8x128xf32>
    %209 = vector.extract_strided_slice %206 {offsets = [0, 256], sizes = [8, 128], strides = [1, 1]} : vector<8x512xf32> to vector<8x128xf32>
    %cst_44 = arith.constant 2.000000e+00 : f32
    %210 = vector.broadcast %cst_44 : f32 to vector<8x128xf32>
    %211 = arith.mulf %210, %209 : vector<8x128xf32>
    %cst_45 = arith.constant 1.000000e+00 : f32
    %212 = vector.broadcast %cst_45 : f32 to vector<8x128xf32>
    %213 = arith.subf %211, %212 : vector<8x128xf32>
    %214 = vector.extract_strided_slice %206 {offsets = [0, 384], sizes = [8, 128], strides = [1, 1]} : vector<8x512xf32> to vector<8x128xf32>
    %215 = arith.mulf %208, %197 : vector<8x128xf32>
    %216 = arith.mulf %207, %213 : vector<8x128xf32>
    %217 = arith.addf %215, %216 : vector<8x128xf32>
    %218 = math.tanh %217 : vector<8x128xf32>
    %219 = arith.mulf %214, %218 : vector<8x128xf32>
    %c32_i32_46 = arith.constant 32 : i32
    %220 = vector.broadcast %c32_i32_46 : i32 to vector<8x128xi32>
    %221 = arith.cmpi sge, %7, %220 : vector<8x128xi32>
    %c96_i32 = arith.constant 96 : i32
    %222 = vector.broadcast %c96_i32 : i32 to vector<8x128xi32>
    %223 = arith.cmpi slt, %7, %222 : vector<8x128xi32>
    %224 = arith.andi %221, %223 : vector<8x128xi1>
    %225 = arith.select %224, %219, %199 : vector<8x128xi1>, vector<8x128xf32>
    %226 = arith.select %224, %217, %197 : vector<8x128xi1>, vector<8x128xf32>
    %cst_47 = arith.constant dense<0.000000e+00> : vector<8x512xf32>
    %227 = tpu.matmul %225, %3, %cst_47 {dimension_numbers = #tpu.dot_dimension_numbers<[1], [0], [0], [1], [0, 0, 1, 1], [], []>} : vector<8x128xf32>, vector<128x512xf32>, vector<8x512xf32> -> vector<8x512xf32>
    %228 = arith.addf %227, %6 : vector<8x512xf32>
    %229 = arith.negf %228 : vector<8x512xf32>
    %230 = math.exp %229 : vector<8x512xf32>
    %cst_48 = arith.constant 1.000000e+00 : f32
    %231 = vector.broadcast %cst_48 : f32 to vector<8x512xf32>
    %232 = arith.addf %231, %230 : vector<8x512xf32>
    %233 = arith.divf %231, %232 : vector<8x512xf32>
    %234 = vector.extract_strided_slice %233 {offsets = [0, 0], sizes = [8, 128], strides = [1, 1]} : vector<8x512xf32> to vector<8x128xf32>
    %235 = vector.extract_strided_slice %233 {offsets = [0, 128], sizes = [8, 128], strides = [1, 1]} : vector<8x512xf32> to vector<8x128xf32>
    %236 = vector.extract_strided_slice %233 {offsets = [0, 256], sizes = [8, 128], strides = [1, 1]} : vector<8x512xf32> to vector<8x128xf32>
    %cst_49 = arith.constant 2.000000e+00 : f32
    %237 = vector.broadcast %cst_49 : f32 to vector<8x128xf32>
    %238 = arith.mulf %237, %236 : vector<8x128xf32>
    %cst_50 = arith.constant 1.000000e+00 : f32
    %239 = vector.broadcast %cst_50 : f32 to vector<8x128xf32>
    %240 = arith.subf %238, %239 : vector<8x128xf32>
    %241 = vector.extract_strided_slice %233 {offsets = [0, 384], sizes = [8, 128], strides = [1, 1]} : vector<8x512xf32> to vector<8x128xf32>
    %242 = arith.mulf %235, %226 : vector<8x128xf32>
    %243 = arith.mulf %234, %240 : vector<8x128xf32>
    %244 = arith.addf %242, %243 : vector<8x128xf32>
    %245 = math.tanh %244 : vector<8x128xf32>
    %246 = arith.mulf %241, %245 : vector<8x128xf32>
    %c64_i32_51 = arith.constant 64 : i32
    %247 = vector.broadcast %c64_i32_51 : i32 to vector<8x128xi32>
    %248 = arith.cmpi sge, %7, %247 : vector<8x128xi32>
    %c96_i32_52 = arith.constant 96 : i32
    %249 = vector.broadcast %c96_i32_52 : i32 to vector<8x128xi32>
    %250 = arith.cmpi slt, %7, %249 : vector<8x128xi32>
    %251 = arith.andi %248, %250 : vector<8x128xi1>
    %252 = arith.select %251, %246, %225 : vector<8x128xi1>, vector<8x128xf32>
    %253 = vector.extract_strided_slice %252 {offsets = [0, 64], sizes = [8, 32], strides = [1, 1]} : vector<8x128xf32> to vector<8x32xf32>
    %c0_53 = arith.constant 0 : index
    %c0_54 = arith.constant 0 : index
    %254 = vector.load %arg4[%c0_53, %c0_54] : memref<32x64xf32, #tpu.memory_space<vmem>>, vector<32x64xf32>
    %cst_55 = arith.constant dense<0.000000e+00> : vector<8x64xf32>
    %255 = tpu.matmul %253, %254, %cst_55 {dimension_numbers = #tpu.dot_dimension_numbers<[1], [0], [0], [1], [0, 0, 1, 1], [], []>} : vector<8x32xf32>, vector<32x64xf32>, vector<8x64xf32> -> vector<8x64xf32>
    %c0_56 = arith.constant 0 : index
    %c0_57 = arith.constant 0 : index
    %256 = vector.load %arg5[%c0_56, %c0_57] : memref<1x64xf32, #tpu.memory_space<vmem>>, vector<1x64xf32>
    %257 = vector.broadcast %256 : vector<1x64xf32> to vector<8x64xf32>
    %258 = arith.addf %255, %257 : vector<8x64xf32>
    %cst_58 = arith.constant 0.000000e+00 : f32
    %259 = vector.broadcast %cst_58 : f32 to vector<8x64xf32>
    %260 = arith.maximumf %258, %259 : vector<8x64xf32>
    %c0_59 = arith.constant 0 : index
    %c0_60 = arith.constant 0 : index
    %261 = vector.load %arg6[%c0_59, %c0_60] : memref<64x1xf32, #tpu.memory_space<vmem>>, vector<64x1xf32>
    %cst_61 = arith.constant dense<0.000000e+00> : vector<8x1xf32>
    %262 = tpu.matmul %260, %261, %cst_61 {dimension_numbers = #tpu.dot_dimension_numbers<[1], [0], [0], [1], [0, 0, 1, 1], [], []>} : vector<8x64xf32>, vector<64x1xf32>, vector<8x1xf32> -> vector<8x1xf32>
    %c0_62 = arith.constant 0 : index
    %c0_63 = arith.constant 0 : index
    %263 = vector.load %arg7[%c0_62, %c0_63] : memref<1x1xf32, #tpu.memory_space<vmem>>, vector<1x1xf32>
    %264 = vector.broadcast %263 : vector<1x1xf32> to vector<8x1xf32>
    %265 = arith.addf %262, %264 : vector<8x1xf32>
    %266 = arith.negf %265 : vector<8x1xf32>
    %267 = math.exp %266 : vector<8x1xf32>
    %cst_64 = arith.constant 1.000000e+00 : f32
    %268 = vector.broadcast %cst_64 : f32 to vector<8x1xf32>
    %269 = arith.addf %268, %267 : vector<8x1xf32>
    %270 = arith.divf %268, %269 : vector<8x1xf32>
    %c0_65 = arith.constant 0 : index
    %c0_66 = arith.constant 0 : index
    %271 = vector.load %arg8[%c0_65, %c0_66] : memref<8x1xf32, #tpu.memory_space<vmem>>, vector<8x1xf32>
    tpu.vector_store %arg8[%c0_65, %c0_66], %270 {strides = array<i32>} : memref<8x1xf32, #tpu.memory_space<vmem>>, vector<8x1xf32>,
    return
  }
}

</mosaic_0001>

<bundles_post_ra>
// kernel: mul.25
= control target key start
LH: loop header
LB: loop body
LE: loop exit
PB: predicated region body
PF: predicated region fallthrough
CT: control target
= control target key end

     0   :  { %s34_s0 = inlined_call_operand.vmem [shape: f32[512], index: 0, kind: input, shape index: {}]   ;;  %s35_s1 = inlined_call_operand.vmem [shape: f32[512], index: 1, kind: input, shape index: {}]   ;;  %s36_s2 = inlined_call_operand.vmem [shape: f32[512], index: 2, kind: output, shape index: {}]  }
   0x1   :  { %v3_v0 = vld [vmem:[%s34_s0] sm:$0xf] }
   0x2   :  { %v4_v1 = vld [vmem:[%s35_s1] sm:$0xf] }
   0x3   :  { %v7_v2 = vmul.f32 %v4_v1, %v3_v0 }
   0x5   :  { %9 = vst [vmem:[%s36_s2] sm:$0xf] %v7_v2 }

// kernel: lstm_model_forward.1
= control target key start
LH: loop header
LB: loop body
LE: loop exit
PB: predicated region body
PF: predicated region fallthrough
CT: control target
= control target key end

     0   :  { %v3389_v3 = vmov 0.0   ;;  %vm47_vm0 = vcmask 130048   ;;  %vm3391_vm6 = vmmov 0   ;;  %s3392_s22 = smov 64   ;;  %vm2179_vm9 = vcmask 261120   ;;  %s4284_s1 = inlined_call_operand.vmem [shape: f32[16,512], index: 1, kind: input, shape index: {}]   ;;  %s4285_s0 = inlined_call_operand.vmem [shape: f32[64,16], index: 0, kind: input, shape index: {}]   ;;  %s4286_s2 = inlined_call_operand.vmem [shape: f32[128,512], index: 2, kind: input, shape index: {}]   ;;  %s4287_s3 = inlined_call_operand.vmem [shape: f32[1,512], index: 3, kind: input, shape index: {}]   ;;  %s4288_s4 = inlined_call_operand.vmem [shape: f32[32,64], index: 4, kind: input, shape index: {}]   ;;  %s4289_s6 = inlined_call_operand.vmem [shape: f32[64,1], index: 6, kind: input, shape index: {}]   ;;  %s4290_s7 = inlined_call_operand.<no memory space> [shape: f32[1,1], index: 7, kind: input, shape index: {}]   ;;  %s4291_s5 = inlined_call_operand.vmem [shape: f32[1,64], index: 5, kind: input, shape index: {}]   ;;  %s4292_s8 = inlined_call_operand.vmem [shape: f32[8,1], index: 8, kind: output, shape index: {}]  }
   0x1   :  { %v40_v0 = vld [vmem:[%s4284_s1 + $0x8] sm:$0xff]  ;;  %v42_v2 = vld [vmem:[%s4284_s1 + $0x18] sm:$0xff]  ;;  %136 = vmatprep.mubr.f32.mxu0 %v3389_v3  ;;  %249 = vmatprep.mubr.f32.mxu1 %v3389_v3  ;;  %v39_v6 = vld [vmem:[%s4284_s1] sm:$0xff]  ;;  %vm2268_vm10 = vcmask 523264   ;;  %vm2348_vm11 = vcmask 7168  }
   0x2   :  { %v44_v1 = vld [vmem:[%s4284_s1 + $0x28] sm:$0xff]  ;;  %v46_v5 = vld [vmem:[%s4284_s1 + $0x38] sm:$0xff]  ;;  %v43_v7 = vld [vmem:[%s4284_s1 + $0x20] sm:$0xff] }
   0x3   :  { %v2471_v4 = vpack.c.bf16 %v44_v1, %v40_v0  ;;  %v2475_v8 = vpack.c.bf16 %v46_v5, %v42_v2  ;;  %v2473_v9 = vpack.c.bf16 %v43_v7, %v39_v6  ;;  %v41_v10 = vld [vmem:[%s4284_s1 + $0x10] sm:$0xff]  ;;  %v31_v12 = vld [vmem:[%s4285_s0] sm:$0xff]  ;;  %v299_v14 = vld [vmem:[%s4286_s2 + $0x8] sm:$0xff] }
   0x4   :  { %v45_v11 = vld [vmem:[%s4284_s1 + $0x30] sm:$0xff]  ;;  %v303_v15 = vld [vmem:[%s4286_s2 + $0x28] sm:$0xff]  ;;  %v301_v16 = vld [vmem:[%s4286_s2 + $0x18] sm:$0xff] }
   0x5   :  { %2472 = vmatprep.subr.bf16.mxu0 %v2471_v4  ;;  %v2477_v13 = vpack.c.bf16 %v45_v11, %v41_v10  ;;  %2476 = vmatprep.subr.bf16.mxu1 %v2475_v8  ;;  %v3476_v17 = vpack.c.bf16 %v303_v15, %v299_v14  ;;  %v305_v18 = vld [vmem:[%s4286_s2 + $0x38] sm:$0xff]  ;;  %v298_v19 = vld [vmem:[%s4286_s2] sm:$0xff]  ;;  %v300_v23 = vld [vmem:[%s4286_s2 + $0x10] sm:$0xff] }
   0x6   :  { %2474 = vmatpush1.bf16.msra.mxu0 %v2473_v9  ;;  %v302_v20 = vld [vmem:[%s4286_s2 + $0x20] sm:$0xff]  ;;  %v3487_v21 = vpack.c.bf16 %v305_v18, %v301_v16  ;;  %v304_v24 = vld [vmem:[%s4286_s2 + $0x30] sm:$0xff]  ;;  %v307_v26 = vld [vmem:[%s4286_s2 + $0x48] sm:$0xff] }
   0x7   :  { %2478 = vmatpush1.bf16.msra.mxu1 %v2477_v13  ;;  %v3489_v22 = vpack.c.bf16 %v302_v20, %v298_v19  ;;  %2480 = vmatprep.subr.bf16.mxu0 %v3476_v17  ;;  %v3498_v25 = vpack.c.bf16 %v304_v24, %v300_v23  ;;  %v311_v27 = vld [vmem:[%s4286_s2 + $0x68] sm:$0xff]  ;;  %v309_v28 = vld [vmem:[%s4286_s2 + $0x58] sm:$0xff]  ;;  %v306_v31 = vld [vmem:[%s4286_s2 + $0x40] sm:$0xff] }
   0x8   :  { %2512 = vmatprep.subr.bf16.mxu1 %v3487_v21  ;;  %v3511_v29 = vpack.c.bf16 %v311_v27, %v307_v26  ;;  %v313_v30 = vld [vmem:[%s4286_s2 + $0x78] sm:$0xff]  ;;  %v310_v32 = vld [vmem:[%s4286_s2 + $0x60] sm:$0xff]  ;;  %v32_v33 = vld [vmem:[%s4285_s0 + $0x8] sm:$0xff] }
   0x9   :  { %2354 = vmatmul.mubr.msk.f32.vlgmr.msra.gmra.mrb[0].mxu0 %vm47_vm0, %v31_v12  ;;  %v3527_v34 = vpack.c.bf16 %v313_v30, %v309_v28  ;;  %v3529_v35 = vpack.c.bf16 %v310_v32, %v306_v31  ;;  %v308_v36 = vld [vmem:[%s4286_s2 + $0x50] sm:$0xff]  ;;  %v315_v39 = vld [vmem:[%s4286_s2 + $0x88] sm:$0xff]  ;;  %v317_v41 = vld [vmem:[%s4286_s2 + $0x98] sm:$0xff] }
   0xa   :  { %2362 = vmatmul.mubr.msk.f32.vlgmr.msra.gmra.mrb[0].mxu1 %vm47_vm0, %v31_v12  ;;  %2482 = vmatpush1.bf16.msra.mxu0 %v3489_v22  ;;  %v312_v37 = vld [vmem:[%s4286_s2 + $0x70] sm:$0xff]  ;;  %v319_v40 = vld [vmem:[%s4286_s2 + $0xa8] sm:$0xff]  ;;  %v321_v43 = vld [vmem:[%s4286_s2 + $0xb8] sm:$0xff] }
   0xb   :  { %2514 = vmatpush1.bf16.msra.mxu1 %v3498_v25  ;;  %142 = vmatprep.mubr.f32.mxu0 %v3389_v3  ;;  %v3539_v38 = vpack.c.bf16 %v312_v37, %v308_v36  ;;  %v3552_v42 = vpack.c.bf16 %v319_v40, %v315_v39  ;;  %v314_v44 = vld [vmem:[%s4286_s2 + $0x80] sm:$0xff]  ;;  %v33_v46 = vld [vmem:[%s4285_s0 + $0x10] sm:$0xff]  ;;  %v3568_v47 = vpack.c.bf16 %v321_v43, %v317_v41  ;;  %v323_v51 = vld [vmem:[%s4286_s2 + $0xc8] sm:$0xff] }
   0xc   :  { %255 = vmatprep.mubr.f32.mxu1 %v3389_v3  ;;  %2484 = vmatprep.subr.bf16.mxu0 %v3511_v29  ;;  %v318_v45 = vld [vmem:[%s4286_s2 + $0xa0] sm:$0xff]  ;;  %v316_v48 = vld [vmem:[%s4286_s2 + $0x90] sm:$0xff]  ;;  %v327_v52 = vld [vmem:[%s4286_s2 + $0xe8] sm:$0xff] }
   0xd   :  { %2355 = vmatmul.mubr.msk.f32.gmra.mrb[2].mxu0 %vm47_vm0, %v32_v33  ;;  %2516 = vmatprep.subr.bf16.mxu1 %v3527_v34  ;;  %v320_v49 = vld [vmem:[%s4286_s2 + $0xb0] sm:$0xff]  ;;  %v3578_v50 = vpack.c.bf16 %v318_v45, %v314_v44  ;;  %v325_v53 = vld [vmem:[%s4286_s2 + $0xd8] sm:$0xff]  ;;  %v322_v56 = vld [vmem:[%s4286_s2 + $0xc0] sm:$0xff]  ;;  %v3604_v58 = vpack.c.bf16 %v327_v52, %v323_v51 }
   0xe   :  { %2363 = vmatmul.mubr.msk.f32.gmra.mrb[2].mxu1 %vm47_vm0, %v32_v33  ;;  %2486 = vmatpush1.bf16.msra.mxu0 %v3529_v35  ;;  %v3591_v54 = vpack.c.bf16 %v320_v49, %v316_v48  ;;  %v329_v55 = vld [vmem:[%s4286_s2 + $0xf8] sm:$0xff]  ;;  %v326_v57 = vld [vmem:[%s4286_s2 + $0xe0] sm:$0xff]  ;;  %v324_v59 = vld [vmem:[%s4286_s2 + $0xd0] sm:$0xff] }
   0xf   :  { %2518 = vmatpush1.bf16.msra.mxu1 %v3539_v38  ;;  %148 = vmatprep.mubr.f32.mxu0 %v3389_v3  ;;  %v328_v60 = vld [vmem:[%s4286_s2 + $0xf0] sm:$0xff]  ;;  %v3614_v61 = vpack.c.bf16 %v329_v55, %v325_v53  ;;  %v331_v62 = vld [vmem:[%s4286_s2 + $0x108] sm:$0xff]  ;;  %v34_v0 = vld [vmem:[%s4285_s0 + $0x18] sm:$0xff]  ;;  %v3627_v1 = vpack.c.bf16 %v326_v57, %v322_v56 }
  0x10   :  { %261 = vmatprep.mubr.f32.mxu1 %v3389_v3  ;;  %2488 = vmatprep.subr.bf16.mxu0 %v3552_v42  ;;  %v335_v63 = vld [vmem:[%s4286_s2 + $0x128] sm:$0xff]  ;;  %v333_v2 = vld [vmem:[%s4286_s2 + $0x118] sm:$0xff]  ;;  %v3637_v5 = vpack.c.bf16 %v328_v60, %v324_v59  ;;  %v330_v6 = vld [vmem:[%s4286_s2 + $0x100] sm:$0xff] }
  0x11   :  { %2356 = vmatmul.mubr.msk.f32.gmra.mrb[4].mxu0 %vm47_vm0, %v33_v46  ;;  %2520 = vmatprep.subr.bf16.mxu1 %v3568_v47  ;;  %v337_v4 = vld [vmem:[%s4286_s2 + $0x138] sm:$0xff]  ;;  %v334_v7 = vld [vmem:[%s4286_s2 + $0x120] sm:$0xff]  ;;  %v3647_v8 = vpack.c.bf16 %v335_v63, %v331_v62  ;;  %v332_v9 = vld [vmem:[%s4286_s2 + $0x110] sm:$0xff] }
  0x12   :  { %2364 = vmatmul.mubr.msk.f32.gmra.mrb[4].mxu1 %vm47_vm0, %v33_v46  ;;  %2490 = vmatpush1.bf16.msra.mxu0 %v3578_v50  ;;  %v336_v10 = vld [vmem:[%s4286_s2 + $0x130] sm:$0xff]  ;;  %v3657_v11 = vpack.c.bf16 %v337_v4, %v333_v2  ;;  %v339_v12 = vld [vmem:[%s4286_s2 + $0x148] sm:$0xff]  ;;  %v35_v14 = vld [vmem:[%s4285_s0 + $0x20] sm:$0xff]  ;;  %v3670_v15 = vpack.c.bf16 %v334_v7, %v330_v6  ;;  %v364_v7 = vlaneseq }
  0x13   :  { %2522 = vmatpush1.bf16.msra.mxu1 %v3591_v54  ;;  %154 = vmatprep.mubr.f32.mxu0 %v3389_v3  ;;  %v343_v13 = vld [vmem:[%s4286_s2 + $0x168] sm:$0xff]  ;;  %v341_v16 = vld [vmem:[%s4286_s2 + $0x158] sm:$0xff]  ;;  %v3680_v19 = vpack.c.bf16 %v336_v10, %v332_v9  ;;  %v338_v20 = vld [vmem:[%s4286_s2 + $0x140] sm:$0xff] }
  0x14   :  { %267 = vmatprep.mubr.f32.mxu1 %v3389_v3  ;;  %2492 = vmatprep.subr.bf16.mxu0 %v3604_v58  ;;  %v345_v18 = vld [vmem:[%s4286_s2 + $0x178] sm:$0xff]  ;;  %v342_v23 = vld [vmem:[%s4286_s2 + $0x160] sm:$0xff]  ;;  %v3690_v24 = vpack.c.bf16 %v343_v13, %v339_v12  ;;  %v340_v26 = vld [vmem:[%s4286_s2 + $0x150] sm:$0xff]  ;;  %v365_v9 = vshrl.u32 %v364_v7, 7 }
  0x15   :  { %2357 = vmatmul.mubr.msk.f32.gmra.mrb[6].mxu0 %vm47_vm0, %v34_v0  ;;  %2524 = vmatprep.subr.bf16.mxu1 %v3614_v61  ;;  %v344_v27 = vld [vmem:[%s4286_s2 + $0x170] sm:$0xff]  ;;  %v3700_v28 = vpack.c.bf16 %v345_v18, %v341_v16  ;;  %v347_v30 = vld [vmem:[%s4286_s2 + $0x188] sm:$0xff]  ;;  %v3713_v33 = vpack.c.bf16 %v342_v23, %v338_v20  ;;  %v349_v36 = vld [vmem:[%s4286_s2 + $0x198] sm:$0xff] }
  0x16   :  { %2365 = vmatmul.mubr.msk.f32.gmra.mrb[6].mxu1 %vm47_vm0, %v34_v0  ;;  %2494 = vmatpush1.bf16.msra.mxu0 %v3627_v1  ;;  %v351_v31 = vld [vmem:[%s4286_s2 + $0x1a8] sm:$0xff]  ;;  %v353_v37 = vld [vmem:[%s4286_s2 + $0x1b8] sm:$0xff]  ;;  %v3723_v39 = vpack.c.bf16 %v344_v27, %v340_v26  ;;  %v346_v40 = vld [vmem:[%s4286_s2 + $0x180] sm:$0xff]  ;;  %v366_v10 = vsub.s32 0, %v365_v9  ;;  %v374_v13 = vsub.s32 2, %v365_v9 }
  0x17   :  { %2526 = vmatpush1.bf16.msra.mxu1 %v3637_v5  ;;  %160 = vmatprep.mubr.f32.mxu0 %v3389_v3  ;;  %v36_v32 = vld [vmem:[%s4285_s0 + $0x28] sm:$0xff]  ;;  %v350_v41 = vld [vmem:[%s4286_s2 + $0x1a0] sm:$0xff]  ;;  %v3733_v43 = vpack.c.bf16 %v351_v31, %v347_v30  ;;  %v348_v44 = vld [vmem:[%s4286_s2 + $0x190] sm:$0xff]  ;;  %v3743_v46 = vpack.c.bf16 %v353_v37, %v349_v36 }
  0x18   :  { %273 = vmatprep.mubr.f32.mxu1 %v3389_v3  ;;  %2496 = vmatprep.subr.bf16.mxu0 %v3647_v8  ;;  %v352_v45 = vld [vmem:[%s4286_s2 + $0x1b0] sm:$0xff]  ;;  %v355_v48 = vld [vmem:[%s4286_s2 + $0x1c8] sm:$0xff]  ;;  %v3756_v52 = vpack.c.bf16 %v350_v41, %v346_v40  ;;  %v357_v53 = vld [vmem:[%s4286_s2 + $0x1d8] sm:$0xff] }
  0x19   :  { %2358 = vmatmul.mubr.msk.f32.gmra.mrb[8].mxu0 %vm47_vm0, %v35_v14  ;;  %2528 = vmatprep.subr.bf16.mxu1 %v3657_v11  ;;  %v359_v49 = vld [vmem:[%s4286_s2 + $0x1e8] sm:$0xff]  ;;  %v37_v51 = vld [vmem:[%s4285_s0 + $0x30] sm:$0xff]  ;;  %v361_v55 = vld [vmem:[%s4286_s2 + $0x1f8] sm:$0xff]  ;;  %v3766_v56 = vpack.c.bf16 %v352_v45, %v348_v44  ;;  %v378_v44 = vsub.s32 3, %v365_v9 }
  0x1a   :  { %2366 = vmatmul.mubr.msk.f32.gmra.mrb[8].mxu1 %vm47_vm0, %v35_v14  ;;  %2498 = vmatpush1.bf16.msra.mxu0 %v3670_v15  ;;  %v354_v57 = vld [vmem:[%s4286_s2 + $0x1c0] sm:$0xff]  ;;  %v3776_v60 = vpack.c.bf16 %v359_v49, %v355_v48  ;;  %v356_v62 = vld [vmem:[%s4286_s2 + $0x1d0] sm:$0xff]  ;;  %v3786_v0 = vpack.c.bf16 %v361_v55, %v357_v53  ;;  %v38_v2 = vld [vmem:[%s4285_s0 + $0x38] sm:$0xff]  ;;  %v370_v14 = vsub.s32 1, %v365_v9 }
  0x1b   :  { %2530 = vmatpush1.bf16.msra.mxu1 %v3680_v19  ;;  %166 = vmatprep.mubr.f32.mxu0 %v3389_v3  ;;  %v358_v59 = vld [vmem:[%s4286_s2 + $0x1e0] sm:$0xff]  ;;  %v360_v63 = vld [vmem:[%s4286_s2 + $0x1f0] sm:$0xff] }
  0x1c   :  { %279 = vmatprep.mubr.f32.mxu1 %v3389_v3  ;;  %2500 = vmatprep.subr.bf16.mxu0 %v3690_v24  ;;  %v3793_v4 = vpack.c.bf16 %v358_v59, %v354_v57  ;;  %v3797_v6 = vpack.c.bf16 %v360_v63, %v356_v62  ;;  %v362_v12 = vld [vmem:[%s4287_s3] sm:$0xf] }
  0x1d   :  { %2359 = vmatmul.mubr.msk.f32.gmra.mrb[10].mxu0 %vm47_vm0, %v36_v32  ;;  %2532 = vmatprep.subr.bf16.mxu1 %v3700_v28  ;;  %v3849_v16 = vrot.slane %v362_v12, %v366_v10  ;;  %v3851_v18 = vrot.slane %v362_v12, %v374_v13  ;;  %v3853_v20 = vrot.slane %v362_v12, %v370_v14  ;;  %v3861_v13 = vand.u32 127, %v364_v7 }
  0x1e   :  { %2367 = vmatmul.mubr.msk.f32.gmra.mrb[10].mxu1 %vm47_vm0, %v36_v32  ;;  %2502 = vmatpush1.bf16.msra.mxu0 %v3713_v33  ;;  %v3858_v45 = vrot.slane %v362_v12, %v378_v44 }
  0x1f   :  { %2534 = vmatpush1.bf16.msra.mxu1 %v3723_v39  ;;  %172 = vmatprep.mubr.f32.mxu0 %v3389_v3  ;;  %vm564_vm1 = vcmp.lt.s32.totalorder %v3861_v13, 32  ;;  %vm745_vm2 = vcmp.lt.s32.totalorder %v3861_v13, 64  ;;  %vm1984_vm3 = vcmp.ge.s32.totalorder %v3861_v13, 32  ;;  %vm1985_vm4 = vcmp.lt.s32.totalorder %v3861_v13, 96 }
  0x20   :  { %285 = vmatprep.mubr.f32.mxu1 %v3389_v3  ;;  %2504 = vmatprep.subr.bf16.mxu0 %v3733_v43  ;;  %vm4209_vm5 = vmand %vm1984_vm3, %vm1985_vm4  ;;  %vm2162_vm7 = vcmp.ge.s32.totalorder %v3861_v13, 64  ;;  %v2260_v13 = vld [vmem:[%s4289_s6 + $0x38] sm:$0xff] }
  0x21   :  { %2360 = vmatmul.mubr.msk.f32.gmra.mrb[12].mxu0 %vm47_vm0, %v37_v51  ;;  %2536 = vmatprep.subr.bf16.mxu1 %v3743_v46  ;;  %vm2163_vm8 = vmand %vm2162_vm7, %vm1985_vm4 }
  0x22   :  { %2368 = vmatmul.mubr.msk.f32.gmra.mrb[12].mxu1 %vm47_vm0, %v37_v51  ;;  %2506 = vmatpush1.bf16.msra.mxu0 %v3756_v52 }
  0x23   :  { %2538 = vmatpush1.bf16.msra.mxu1 %v3766_v56  ;;  %178 = vmatprep.mubr.f32.mxu0 %v3389_v3 }
  0x24   :  { %291 = vmatprep.mubr.f32.mxu1 %v3389_v3  ;;  %2508 = vmatprep.subr.bf16.mxu0 %v3776_v60 }
  0x25   :  { %2361 = vmatmul.mubr.msk.f32.gmra.mrb[14].mxu0 %vm47_vm0, %v38_v2  ;;  %2540 = vmatprep.subr.bf16.mxu1 %v3786_v0 }
  0x26   :  { %2369 = vmatmul.mubr.msk.f32.gmra.mrb[14].mxu1 %vm47_vm0, %v38_v2  ;;  %2510 = vmatpush1.bf16.msra.mxu0 %v3793_v4 }
  0x27   :  { %2542 = vmatpush1.bf16.msra.mxu1 %v3797_v6  ;;  %450 = vmatprep.mubr.f32.mxu0 %v3389_v3 }
  0x28   :  { %521 = vmatprep.mubr.f32.mxu1 %v3389_v3  ;;  %2544 = vmatprep.subr.bf16.mxu0 %v3476_v17 }
  0x29   :  { %451 = vmatmul.mubr.f32.vlgmr.msra.gmra.mrb[0].mxu0 %v3389_v3  ;;  %2576 = vmatprep.subr.bf16.mxu1 %v3487_v21 }
  0x2a   :  { %522 = vmatmul.mubr.f32.vlgmr.msra.gmra.mrb[0].mxu1 %v3389_v3  ;;  %2546 = vmatpush1.bf16.msra.mxu0 %v3489_v22 }
  0x2b   :  { %2578 = vmatpush1.bf16.msra.mxu1 %v3498_v25  ;;  %2548 = vmatprep.subr.bf16.mxu0 %v3511_v29 }
  0x2c   :  { %2580 = vmatprep.subr.bf16.mxu1 %v3527_v34  ;;  %632 = vmatprep.mubr.f32.mxu0 %v3389_v3 }
  0x2d   :  { %703 = vmatprep.mubr.f32.mxu1 %v3389_v3 }
  0x2e   :  { %2550 = vmatpush1.bf16.msra.mxu0 %v3529_v35 }
  0x2f   :  { %2582 = vmatpush1.bf16.msra.mxu1 %v3539_v38  ;;  %2552 = vmatprep.subr.bf16.mxu0 %v3552_v42 }
  0x30   :  { %2584 = vmatprep.subr.bf16.mxu1 %v3568_v47 }
  0x32   :  { %2554 = vmatpush1.bf16.msra.mxu0 %v3578_v50 }
  0x33   :  { %2586 = vmatpush1.bf16.msra.mxu1 %v3591_v54  ;;  %2556 = vmatprep.subr.bf16.mxu0 %v3604_v58 }
  0x34   :  { %2588 = vmatprep.subr.bf16.mxu1 %v3614_v61 }
  0x36   :  { %2558 = vmatpush1.bf16.msra.mxu0 %v3627_v1 }
  0x37   :  { %2590 = vmatpush1.bf16.msra.mxu1 %v3637_v5  ;;  %2560 = vmatprep.subr.bf16.mxu0 %v3647_v8 }
  0x38   :  { %2592 = vmatprep.subr.bf16.mxu1 %v3657_v11 }
  0x3a   :  { %2562 = vmatpush1.bf16.msra.mxu0 %v3670_v15 }
  0x3b   :  { %2594 = vmatpush1.bf16.msra.mxu1 %v3680_v19  ;;  %2564 = vmatprep.subr.bf16.mxu0 %v3690_v24 }
  0x3c   :  { %2596 = vmatprep.subr.bf16.mxu1 %v3700_v28 }
  0x3e   :  { %2566 = vmatpush1.bf16.msra.mxu0 %v3713_v33 }
  0x3f   :  { %2598 = vmatpush1.bf16.msra.mxu1 %v3723_v39  ;;  %2568 = vmatprep.subr.bf16.mxu0 %v3733_v43 }
  0x40   :  { %2600 = vmatprep.subr.bf16.mxu1 %v3743_v46 }
  0x42   :  { %2570 = vmatpush1.bf16.msra.mxu0 %v3756_v52 }
  0x43   :  { %2602 = vmatpush1.bf16.msra.mxu1 %v3766_v56  ;;  %2572 = vmatprep.subr.bf16.mxu0 %v3776_v60 }
  0x44   :  { %2604 = vmatprep.subr.bf16.mxu1 %v3786_v0 }
  0x46   :  { %2574 = vmatpush1.bf16.msra.mxu0 %v3793_v4 }
  0x47   :  { %2606 = vmatpush1.bf16.msra.mxu1 %v3797_v6  ;;  %2608 = vmatprep.subr.bf16.mxu0 %v3476_v17 }
  0x48   :  { %2640 = vmatprep.subr.bf16.mxu1 %v3487_v21 }
  0xfc   :  { %v452_v23 = vpop.f32.mrb[0].mxu0 }
  0xfd   :  { %v453_v26 = vadd.f32 %v452_v23, %v3849_v16  ;;  %v523_v27 = vpop.f32.mrb[0].mxu1  ;;  %v454_v30 = vpop.f32.mrb[1].mxu0 }
  0xfe   :  { %v524_v31 = vadd.f32 %v523_v27, %v3851_v18  ;;  %v455_v32 = vadd.f32 %v454_v30, %v3853_v20  ;;  %v525_v36 = vpop.f32.mrb[1].mxu1 }
  0xff   :  { %v2370_v37 = vmul.f32 -1.442695, %v453_v26  ;;  %v526_v48 = vadd.f32 %v525_v36, %v3858_v45 }
 0x100   :  { %v2372_v40 = vmul.f32 -1.442695, %v524_v31  ;;  %v2371_v41 = vmul.f32 -1.442695, %v455_v32 }
 0x101   :  { %3205 = vpow2.f32 %v2370_v37  ;;  %v2373_v53 = vmul.f32 -1.442695, %v526_v48 }
 0x102   :  { %3207 = vpow2.f32 %v2372_v40 }
 0x103   :  { %3209 = vpow2.f32 %v2371_v41 }
 0x10b   :  { %v3206_v49 = vpop.eup %3205 }
 0x10c   :  { %v3208_v51 = vpop.eup %3207  ;;  %v544_v62 = vadd.f32 1.0, %v3206_v49 }
 0x10d   :  { %v3210_v55 = vpop.eup %3209  ;;  %v546_v57 = vadd.f32 1.0, %v3208_v51 }
 0x10e   :  { %v545_v59 = vadd.f32 1.0, %v3210_v55 }
 0x10f   :  { %3211 = vrcp.f32 %v546_v57 }
 0x110   :  { %3213 = vpow2.f32 %v2373_v53 }
 0x111   :  { %3215 = vrcp.f32 %v545_v59 }
 0x112   :  { %3217 = vrcp.f32 %v544_v62 }
 0x119   :  { %v3212_v63 = vpop.eup %3211 }
 0x11a   :  { %v3214_v2 = vpop.eup %3213  ;;  %v556_v9 = vmul.f32 2.0, %v3212_v63 }
 0x11b   :  { %v3216_v10 = vpop.eup %3215  ;;  %v547_v23 = vadd.f32 1.0, %v3214_v2 }
 0x11c   :  { %v2374_v12 = vadd.f32 -1.0, %v556_v9  ;;  %v3218_v14 = vpop.eup %3217  ;;  %v558_v27 = vmul.f32 0.0, %v3216_v10 }
 0x11d   :  { %3219 = vrcp.f32 %v547_v23 }
 0x11e   :  { %v559_v26 = vmul.f32 %v3218_v14, %v2374_v12 }
 0x120   :  { %v560_v30 = vadd.f32 %v559_v26, %v558_v27 }
 0x122   :  { %3221 = vtanh.f32 %v560_v30  ;;  %v3864_v31 = vsel %vm564_vm1, %v560_v30, 0.0 }
 0x127   :  { %v3220_v32 = vpop.eup %3219 }
 0x12c   :  { %v3222_v36 = vpop.eup %3221 }
 0x12d   :  { %v562_v37 = vmul.f32 %v3222_v36, %v3220_v32 }
 0x12f   :  { %2375 = vmatmul.mubr.msk.f32.vlgmr.msra.gmra.mrb[2].mxu0 %vm564_vm1, %v562_v37  ;;  %2376 = vmatmul.mubr.msk.f32.vlgmr.msra.gmra.mrb[2].mxu1 %vm564_vm1, %v562_v37  ;;  %v3866_v40 = vsel %vm564_vm1, %v562_v37, 0.0 }
 0x130   :  { %2610 = vmatpush1.bf16.msra.mxu0 %v3489_v22  ;;  %2642 = vmatpush1.bf16.msra.mxu1 %v3498_v25 }
 0x131   :  { %2612 = vmatprep.subr.bf16.mxu0 %v3511_v29  ;;  %2644 = vmatprep.subr.bf16.mxu1 %v3527_v34 }
 0x132   :  { %813 = vmatprep.mubr.f32.mxu0 %v3389_v3  ;;  %884 = vmatprep.mubr.f32.mxu1 %v3389_v3 }
 0x134   :  { %2614 = vmatpush1.bf16.msra.mxu0 %v3529_v35  ;;  %2646 = vmatpush1.bf16.msra.mxu1 %v3539_v38 }
 0x135   :  { %2616 = vmatprep.subr.bf16.mxu0 %v3552_v42  ;;  %2648 = vmatprep.subr.bf16.mxu1 %v3568_v47 }
 0x138   :  { %2618 = vmatpush1.bf16.msra.mxu0 %v3578_v50  ;;  %2650 = vmatpush1.bf16.msra.mxu1 %v3591_v54 }
 0x139   :  { %2620 = vmatprep.subr.bf16.mxu0 %v3604_v58  ;;  %2652 = vmatprep.subr.bf16.mxu1 %v3614_v61 }
 0x13c   :  { %2622 = vmatpush1.bf16.msra.mxu0 %v3627_v1  ;;  %2654 = vmatpush1.bf16.msra.mxu1 %v3637_v5 }
 0x13d   :  { %2624 = vmatprep.subr.bf16.mxu0 %v3647_v8  ;;  %2656 = vmatprep.subr.bf16.mxu1 %v3657_v11 }
 0x140   :  { %2626 = vmatpush1.bf16.msra.mxu0 %v3670_v15  ;;  %2658 = vmatpush1.bf16.msra.mxu1 %v3680_v19 }
 0x141   :  { %2628 = vmatprep.subr.bf16.mxu0 %v3690_v24  ;;  %2660 = vmatprep.subr.bf16.mxu1 %v3700_v28 }
 0x144   :  { %2630 = vmatpush1.bf16.msra.mxu0 %v3713_v33  ;;  %2662 = vmatpush1.bf16.msra.mxu1 %v3723_v39 }
 0x145   :  { %2632 = vmatprep.subr.bf16.mxu0 %v3733_v43  ;;  %2664 = vmatprep.subr.bf16.mxu1 %v3743_v46 }
 0x148   :  { %2634 = vmatpush1.bf16.msra.mxu0 %v3756_v52  ;;  %2666 = vmatpush1.bf16.msra.mxu1 %v3766_v56 }
 0x149   :  { %2636 = vmatprep.subr.bf16.mxu0 %v3776_v60  ;;  %2668 = vmatprep.subr.bf16.mxu1 %v3786_v0 }
 0x14c   :  { %2638 = vmatpush1.bf16.msra.mxu0 %v3793_v4  ;;  %2670 = vmatpush1.bf16.msra.mxu1 %v3797_v6 }
 0x14d   :  { %2672 = vmatprep.subr.bf16.mxu0 %v3476_v17  ;;  %2704 = vmatprep.subr.bf16.mxu1 %v3487_v21 }
 0x202   :  { %v634_v7 = vpop.f32.mrb[2].mxu0  ;;  %v705_v41 = vpop.f32.mrb[2].mxu1 }
 0x203   :  { %v635_v44 = vadd.f32 %v634_v7, %v3849_v16  ;;  %v706_v48 = vadd.f32 %v705_v41, %v3851_v18  ;;  %v636_v49 = vpop.f32.mrb[3].mxu0  ;;  %v707_v51 = vpop.f32.mrb[3].mxu1 }
 0x204   :  { %v637_v53 = vadd.f32 %v636_v49, %v3853_v20  ;;  %v708_v62 = vadd.f32 %v707_v51, %v3858_v45 }
 0x205   :  { %v2377_v55 = vmul.f32 -1.442695, %v635_v44  ;;  %v2379_v57 = vmul.f32 -1.442695, %v706_v48 }
 0x206   :  { %v2378_v59 = vmul.f32 -1.442695, %v637_v53  ;;  %v2380_v63 = vmul.f32 -1.442695, %v708_v62 }
 0x207   :  { %3223 = vpow2.f32 %v2377_v55 }
 0x208   :  { %3225 = vpow2.f32 %v2379_v57 }
 0x209   :  { %3227 = vpow2.f32 %v2378_v59 }
 0x20a   :  { %3229 = vpow2.f32 %v2380_v63 }
 0x211   :  { %v3224_v2 = vpop.eup %3223 }
 0x212   :  { %v3226_v9 = vpop.eup %3225  ;;  %v726_v23 = vadd.f32 1.0, %v3224_v2 }
 0x213   :  { %v3228_v10 = vpop.eup %3227  ;;  %v728_v12 = vadd.f32 1.0, %v3226_v9 }
 0x214   :  { %v727_v14 = vadd.f32 1.0, %v3228_v10  ;;  %v3230_v26 = vpop.eup %3229 }
 0x215   :  { %3231 = vrcp.f32 %v728_v12  ;;  %v729_v41 = vadd.f32 1.0, %v3230_v26 }
 0x216   :  { %3233 = vrcp.f32 %v727_v14 }
 0x217   :  { %3235 = vrcp.f32 %v726_v23 }
 0x218   :  { %3237 = vrcp.f32 %v729_v41 }
 0x21f   :  { %v3232_v27 = vpop.eup %3231 }
 0x220   :  { %v3234_v30 = vpop.eup %3233  ;;  %v738_v32 = vmul.f32 2.0, %v3232_v27 }
 0x221   :  { %v740_v36 = vmul.f32 %v3234_v30, %v3864_v31  ;;  %v3236_v7 = vpop.eup %3235 }
 0x222   :  { %v2381_v37 = vadd.f32 -1.0, %v738_v32  ;;  %v3238_v51 = vpop.eup %3237 }
 0x224   :  { %v741_v44 = vmul.f32 %v3236_v7, %v2381_v37 }
 0x226   :  { %v742_v48 = vadd.f32 %v741_v44, %v740_v36 }
 0x228   :  { %3239 = vtanh.f32 %v742_v48  ;;  %v3909_v49 = vsel %vm745_vm2, %v742_v48, %v3864_v31 }
 0x232   :  { %v3240_v53 = vpop.eup %3239 }
 0x233   :  { %v744_v55 = vmul.f32 %v3240_v53, %v3238_v51 }
 0x235   :  { %v747_v57 = vsel %vm745_vm2, %v744_v55, %v3866_v40 }
 0x236   :  { %814 = vmatmul.mubr.f32.vlgmr.msra.gmra.mrb[4].mxu0 %v747_v57  ;;  %885 = vmatmul.mubr.f32.vlgmr.msra.gmra.mrb[4].mxu1 %v747_v57 }
 0x237   :  { %2674 = vmatpush1.bf16.msra.mxu0 %v3489_v22  ;;  %2706 = vmatpush1.bf16.msra.mxu1 %v3498_v25 }
 0x238   :  { %2676 = vmatprep.subr.bf16.mxu0 %v3511_v29  ;;  %2708 = vmatprep.subr.bf16.mxu1 %v3527_v34 }
 0x239   :  { %990 = vmatprep.mubr.f32.mxu0 %v3389_v3  ;;  %1061 = vmatprep.mubr.f32.mxu1 %v3389_v3 }
 0x23b   :  { %2678 = vmatpush1.bf16.msra.mxu0 %v3529_v35  ;;  %2710 = vmatpush1.bf16.msra.mxu1 %v3539_v38 }
 0x23c   :  { %2680 = vmatprep.subr.bf16.mxu0 %v3552_v42  ;;  %2712 = vmatprep.subr.bf16.mxu1 %v3568_v47 }
 0x23f   :  { %2682 = vmatpush1.bf16.msra.mxu0 %v3578_v50  ;;  %2714 = vmatpush1.bf16.msra.mxu1 %v3591_v54 }
 0x240   :  { %2684 = vmatprep.subr.bf16.mxu0 %v3604_v58  ;;  %2716 = vmatprep.subr.bf16.mxu1 %v3614_v61 }
 0x243   :  { %2686 = vmatpush1.bf16.msra.mxu0 %v3627_v1  ;;  %2718 = vmatpush1.bf16.msra.mxu1 %v3637_v5 }
 0x244   :  { %2688 = vmatprep.subr.bf16.mxu0 %v3647_v8  ;;  %2720 = vmatprep.subr.bf16.mxu1 %v3657_v11 }
 0x247   :  { %2690 = vmatpush1.bf16.msra.mxu0 %v3670_v15  ;;  %2722 = vmatpush1.bf16.msra.mxu1 %v3680_v19 }
 0x248   :  { %2692 = vmatprep.subr.bf16.mxu0 %v3690_v24  ;;  %2724 = vmatprep.subr.bf16.mxu1 %v3700_v28 }
 0x24b   :  { %2694 = vmatpush1.bf16.msra.mxu0 %v3713_v33  ;;  %2726 = vmatpush1.bf16.msra.mxu1 %v3723_v39 }
 0x24c   :  { %2696 = vmatprep.subr.bf16.mxu0 %v3733_v43  ;;  %2728 = vmatprep.subr.bf16.mxu1 %v3743_v46 }
 0x24f   :  { %2698 = vmatpush1.bf16.msra.mxu0 %v3756_v52  ;;  %2730 = vmatpush1.bf16.msra.mxu1 %v3766_v56 }
 0x250   :  { %2700 = vmatprep.subr.bf16.mxu0 %v3776_v60  ;;  %2732 = vmatprep.subr.bf16.mxu1 %v3786_v0 }
 0x253   :  { %2702 = vmatpush1.bf16.msra.mxu0 %v3793_v4  ;;  %2734 = vmatpush1.bf16.msra.mxu1 %v3797_v6 }
 0x254   :  { %2736 = vmatprep.subr.bf16.mxu0 %v3476_v17  ;;  %2768 = vmatprep.subr.bf16.mxu1 %v3487_v21 }
 0x309   :  { %v815_v31 = vpop.f32.mrb[4].mxu0  ;;  %v886_v40 = vpop.f32.mrb[4].mxu1 }
 0x30a   :  { %v816_v59 = vadd.f32 %v815_v31, %v3849_v16  ;;  %v887_v62 = vadd.f32 %v886_v40, %v3851_v18  ;;  %v817_v63 = vpop.f32.mrb[5].mxu0  ;;  %v888_v2 = vpop.f32.mrb[5].mxu1 }
 0x30b   :  { %v818_v9 = vadd.f32 %v817_v63, %v3853_v20  ;;  %v889_v23 = vadd.f32 %v888_v2, %v3858_v45 }
 0x30c   :  { %v2382_v10 = vmul.f32 -1.442695, %v816_v59  ;;  %v2384_v12 = vmul.f32 -1.442695, %v887_v62 }
 0x30d   :  { %v2383_v14 = vmul.f32 -1.442695, %v818_v9  ;;  %v2385_v26 = vmul.f32 -1.442695, %v889_v23 }
 0x30e   :  { %3241 = vpow2.f32 %v2382_v10 }
 0x30f   :  { %3243 = vpow2.f32 %v2384_v12 }
 0x310   :  { %3245 = vpow2.f32 %v2383_v14 }
 0x311   :  { %3247 = vpow2.f32 %v2385_v26 }
 0x318   :  { %v3242_v27 = vpop.eup %3241 }
 0x319   :  { %v3244_v30 = vpop.eup %3243  ;;  %v907_v7 = vadd.f32 1.0, %v3242_v27 }
 0x31a   :  { %v3246_v32 = vpop.eup %3245  ;;  %v909_v36 = vadd.f32 1.0, %v3244_v30 }
 0x31b   :  { %v908_v37 = vadd.f32 1.0, %v3246_v32  ;;  %v3248_v41 = vpop.eup %3247 }
 0x31c   :  { %3249 = vrcp.f32 %v909_v36  ;;  %v910_v31 = vadd.f32 1.0, %v3248_v41 }
 0x31d   :  { %3251 = vrcp.f32 %v908_v37 }
 0x31e   :  { %3253 = vrcp.f32 %v907_v7 }
 0x31f   :  { %3255 = vrcp.f32 %v910_v31 }
 0x326   :  { %v3250_v44 = vpop.eup %3249 }
 0x327   :  { %v3252_v48 = vpop.eup %3251  ;;  %v919_v51 = vmul.f32 2.0, %v3250_v44 }
 0x328   :  { %v921_v53 = vmul.f32 %v3252_v48, %v3909_v49  ;;  %v3254_v57 = vpop.eup %3253 }
 0x329   :  { %v2386_v55 = vadd.f32 -1.0, %v919_v51  ;;  %v3256_v62 = vpop.eup %3255 }
 0x32b   :  { %v922_v40 = vmul.f32 %v3254_v57, %v2386_v55 }
 0x32d   :  { %v3951_v59 = vadd.f32 %v922_v40, %v921_v53 }
 0x32f   :  { %3257 = vtanh.f32 %v3951_v59 }
 0x339   :  { %v3258_v63 = vpop.eup %3257 }
 0x33a   :  { %v925_v2 = vmul.f32 %v3258_v63, %v3256_v62 }
 0x33c   :  { %991 = vmatmul.mubr.f32.vlgmr.msra.gmra.mrb[6].mxu0 %v925_v2  ;;  %1062 = vmatmul.mubr.f32.vlgmr.msra.gmra.mrb[6].mxu1 %v925_v2 }
 0x33d   :  { %2738 = vmatpush1.bf16.msra.mxu0 %v3489_v22  ;;  %2770 = vmatpush1.bf16.msra.mxu1 %v3498_v25 }
 0x33e   :  { %2740 = vmatprep.subr.bf16.mxu0 %v3511_v29  ;;  %2772 = vmatprep.subr.bf16.mxu1 %v3527_v34 }
 0x33f   :  { %1167 = vmatprep.mubr.f32.mxu0 %v3389_v3  ;;  %1238 = vmatprep.mubr.f32.mxu1 %v3389_v3 }
 0x341   :  { %2742 = vmatpush1.bf16.msra.mxu0 %v3529_v35  ;;  %2774 = vmatpush1.bf16.msra.mxu1 %v3539_v38 }
 0x342   :  { %2744 = vmatprep.subr.bf16.mxu0 %v3552_v42  ;;  %2776 = vmatprep.subr.bf16.mxu1 %v3568_v47 }
 0x345   :  { %2746 = vmatpush1.bf16.msra.mxu0 %v3578_v50  ;;  %2778 = vmatpush1.bf16.msra.mxu1 %v3591_v54 }
 0x346   :  { %2748 = vmatprep.subr.bf16.mxu0 %v3604_v58  ;;  %2780 = vmatprep.subr.bf16.mxu1 %v3614_v61 }
 0x349   :  { %2750 = vmatpush1.bf16.msra.mxu0 %v3627_v1  ;;  %2782 = vmatpush1.bf16.msra.mxu1 %v3637_v5 }
 0x34a   :  { %2752 = vmatprep.subr.bf16.mxu0 %v3647_v8  ;;  %2784 = vmatprep.subr.bf16.mxu1 %v3657_v11 }
 0x34d   :  { %2754 = vmatpush1.bf16.msra.mxu0 %v3670_v15  ;;  %2786 = vmatpush1.bf16.msra.mxu1 %v3680_v19 }
 0x34e   :  { %2756 = vmatprep.subr.bf16.mxu0 %v3690_v24  ;;  %2788 = vmatprep.subr.bf16.mxu1 %v3700_v28 }
 0x351   :  { %2758 = vmatpush1.bf16.msra.mxu0 %v3713_v33  ;;  %2790 = vmatpush1.bf16.msra.mxu1 %v3723_v39 }
 0x352   :  { %2760 = vmatprep.subr.bf16.mxu0 %v3733_v43  ;;  %2792 = vmatprep.subr.bf16.mxu1 %v3743_v46 }
 0x355   :  { %2762 = vmatpush1.bf16.msra.mxu0 %v3756_v52  ;;  %2794 = vmatpush1.bf16.msra.mxu1 %v3766_v56 }
 0x356   :  { %2764 = vmatprep.subr.bf16.mxu0 %v3776_v60  ;;  %2796 = vmatprep.subr.bf16.mxu1 %v3786_v0 }
 0x359   :  { %2766 = vmatpush1.bf16.msra.mxu0 %v3793_v4  ;;  %2798 = vmatpush1.bf16.msra.mxu1 %v3797_v6 }
 0x35a   :  { %2800 = vmatprep.subr.bf16.mxu0 %v3476_v17  ;;  %2832 = vmatprep.subr.bf16.mxu1 %v3487_v21 }
 0x40f   :  { %v992_v49 = vpop.f32.mrb[6].mxu0  ;;  %v1063_v9 = vpop.f32.mrb[6].mxu1 }
 0x410   :  { %v993_v10 = vadd.f32 %v992_v49, %v3849_v16  ;;  %v1064_v12 = vadd.f32 %v1063_v9, %v3851_v18  ;;  %v994_v14 = vpop.f32.mrb[7].mxu0  ;;  %v1065_v23 = vpop.f32.mrb[7].mxu1 }
 0x411   :  { %v995_v26 = vadd.f32 %v994_v14, %v3853_v20  ;;  %v1066_v36 = vadd.f32 %v1065_v23, %v3858_v45 }
 0x412   :  { %v2387_v27 = vmul.f32 -1.442695, %v993_v10  ;;  %v2389_v30 = vmul.f32 -1.442695, %v1064_v12 }
 0x413   :  { %v2388_v32 = vmul.f32 -1.442695, %v995_v26  ;;  %v2390_v41 = vmul.f32 -1.442695, %v1066_v36 }
 0x414   :  { %3259 = vpow2.f32 %v2387_v27 }
 0x415   :  { %3261 = vpow2.f32 %v2389_v30 }
 0x416   :  { %3263 = vpow2.f32 %v2388_v32 }
 0x41e   :  { %v3260_v37 = vpop.eup %3259 }
 0x41f   :  { %v3262_v7 = vpop.eup %3261  ;;  %v1084_v53 = vadd.f32 1.0, %v3260_v37 }
 0x420   :  { %v3264_v44 = vpop.eup %3263  ;;  %v1086_v48 = vadd.f32 1.0, %v3262_v7 }
 0x421   :  { %v1085_v51 = vadd.f32 1.0, %v3264_v44 }
 0x422   :  { %3265 = vrcp.f32 %v1086_v48 }
 0x423   :  { %3267 = vpow2.f32 %v2390_v41 }
 0x424   :  { %3269 = vrcp.f32 %v1085_v51 }
 0x425   :  { %3271 = vrcp.f32 %v1084_v53 }
 0x42c   :  { %v3266_v55 = vpop.eup %3265 }
 0x42d   :  { %v3268_v57 = vpop.eup %3267  ;;  %v1096_v31 = vmul.f32 2.0, %v3266_v55 }
 0x42e   :  { %v3270_v40 = vpop.eup %3269  ;;  %v1087_v2 = vadd.f32 1.0, %v3268_v57 }
 0x42f   :  { %v2391_v62 = vadd.f32 -1.0, %v1096_v31  ;;  %v3272_v63 = vpop.eup %3271  ;;  %v1098_v9 = vmul.f32 %v3270_v40, %v3951_v59 }
 0x430   :  { %3273 = vrcp.f32 %v1087_v2 }
 0x431   :  { %v1099_v49 = vmul.f32 %v3272_v63, %v2391_v62 }
 0x433   :  { %v3993_v10 = vadd.f32 %v1099_v49, %v1098_v9 }
 0x435   :  { %3275 = vtanh.f32 %v3993_v10 }
 0x43a   :  { %v3274_v12 = vpop.eup %3273 }
 0x43f   :  { %v3276_v14 = vpop.eup %3275 }
 0x440   :  { %v1102_v23 = vmul.f32 %v3276_v14, %v3274_v12 }
 0x442   :  { %1168 = vmatmul.mubr.f32.vlgmr.msra.gmra.mrb[8].mxu0 %v1102_v23  ;;  %1239 = vmatmul.mubr.f32.vlgmr.msra.gmra.mrb[8].mxu1 %v1102_v23 }
 0x443   :  { %2802 = vmatpush1.bf16.msra.mxu0 %v3489_v22  ;;  %2834 = vmatpush1.bf16.msra.mxu1 %v3498_v25 }
 0x444   :  { %2804 = vmatprep.subr.bf16.mxu0 %v3511_v29  ;;  %2836 = vmatprep.subr.bf16.mxu1 %v3527_v34 }
 0x445   :  { %1344 = vmatprep.mubr.f32.mxu0 %v3389_v3  ;;  %1415 = vmatprep.mubr.f32.mxu1 %v3389_v3 }
 0x447   :  { %2806 = vmatpush1.bf16.msra.mxu0 %v3529_v35  ;;  %2838 = vmatpush1.bf16.msra.mxu1 %v3539_v38 }
 0x448   :  { %2808 = vmatprep.subr.bf16.mxu0 %v3552_v42  ;;  %2840 = vmatprep.subr.bf16.mxu1 %v3568_v47 }
 0x44b   :  { %2810 = vmatpush1.bf16.msra.mxu0 %v3578_v50  ;;  %2842 = vmatpush1.bf16.msra.mxu1 %v3591_v54 }
 0x44c   :  { %2812 = vmatprep.subr.bf16.mxu0 %v3604_v58  ;;  %2844 = vmatprep.subr.bf16.mxu1 %v3614_v61 }
 0x44f   :  { %2814 = vmatpush1.bf16.msra.mxu0 %v3627_v1  ;;  %2846 = vmatpush1.bf16.msra.mxu1 %v3637_v5 }
 0x450   :  { %2816 = vmatprep.subr.bf16.mxu0 %v3647_v8  ;;  %2848 = vmatprep.subr.bf16.mxu1 %v3657_v11 }
 0x453   :  { %2818 = vmatpush1.bf16.msra.mxu0 %v3670_v15  ;;  %2850 = vmatpush1.bf16.msra.mxu1 %v3680_v19 }
 0x454   :  { %2820 = vmatprep.subr.bf16.mxu0 %v3690_v24  ;;  %2852 = vmatprep.subr.bf16.mxu1 %v3700_v28 }
 0x457   :  { %2822 = vmatpush1.bf16.msra.mxu0 %v3713_v33  ;;  %2854 = vmatpush1.bf16.msra.mxu1 %v3723_v39 }
 0x458   :  { %2824 = vmatprep.subr.bf16.mxu0 %v3733_v43  ;;  %2856 = vmatprep.subr.bf16.mxu1 %v3743_v46 }
 0x45b   :  { %2826 = vmatpush1.bf16.msra.mxu0 %v3756_v52  ;;  %2858 = vmatpush1.bf16.msra.mxu1 %v3766_v56 }
 0x45c   :  { %2828 = vmatprep.subr.bf16.mxu0 %v3776_v60  ;;  %2860 = vmatprep.subr.bf16.mxu1 %v3786_v0 }
 0x45f   :  { %2830 = vmatpush1.bf16.msra.mxu0 %v3793_v4  ;;  %2862 = vmatpush1.bf16.msra.mxu1 %v3797_v6 }
 0x460   :  { %2864 = vmatprep.subr.bf16.mxu0 %v3476_v17  ;;  %2896 = vmatprep.subr.bf16.mxu1 %v3487_v21 }
 0x515   :  { %v1169_v59 = vpop.f32.mrb[8].mxu0  ;;  %v1240_v26 = vpop.f32.mrb[8].mxu1 }
 0x516   :  { %v1170_v27 = vadd.f32 %v1169_v59, %v3849_v16  ;;  %v1241_v30 = vadd.f32 %v1240_v26, %v3851_v18  ;;  %v1171_v32 = vpop.f32.mrb[9].mxu0  ;;  %v1242_v36 = vpop.f32.mrb[9].mxu1 }
 0x517   :  { %v1172_v37 = vadd.f32 %v1171_v32, %v3853_v20  ;;  %v1243_v48 = vadd.f32 %v1242_v36, %v3858_v45 }
 0x518   :  { %v2392_v7 = vmul.f32 -1.442695, %v1170_v27  ;;  %v2394_v41 = vmul.f32 -1.442695, %v1241_v30 }
 0x519   :  { %v2393_v44 = vmul.f32 -1.442695, %v1172_v37  ;;  %v2395_v55 = vmul.f32 -1.442695, %v1243_v48 }
 0x51a   :  { %3277 = vpow2.f32 %v2392_v7 }
 0x51b   :  { %3279 = vpow2.f32 %v2394_v41 }
 0x51c   :  { %3281 = vpow2.f32 %v2393_v44 }
 0x524   :  { %v3278_v51 = vpop.eup %3277 }
 0x525   :  { %v3280_v53 = vpop.eup %3279  ;;  %v1261_v62 = vadd.f32 1.0, %v3278_v51 }
 0x526   :  { %v3282_v57 = vpop.eup %3281  ;;  %v1263_v31 = vadd.f32 1.0, %v3280_v53 }
 0x527   :  { %v1262_v40 = vadd.f32 1.0, %v3282_v57 }
 0x528   :  { %3283 = vrcp.f32 %v1263_v31 }
 0x529   :  { %3285 = vpow2.f32 %v2395_v55 }
 0x52a   :  { %3287 = vrcp.f32 %v1262_v40 }
 0x52b   :  { %3289 = vrcp.f32 %v1261_v62 }
 0x532   :  { %v3284_v63 = vpop.eup %3283 }
 0x533   :  { %v3286_v2 = vpop.eup %3285  ;;  %v1273_v49 = vmul.f32 2.0, %v3284_v63 }
 0x534   :  { %v3288_v9 = vpop.eup %3287  ;;  %v1264_v23 = vadd.f32 1.0, %v3286_v2 }
 0x535   :  { %v2396_v12 = vadd.f32 -1.0, %v1273_v49  ;;  %v3290_v14 = vpop.eup %3289  ;;  %v1275_v26 = vmul.f32 %v3288_v9, %v3993_v10 }
 0x536   :  { %3291 = vrcp.f32 %v1264_v23 }
 0x537   :  { %v1276_v59 = vmul.f32 %v3290_v14, %v2396_v12 }
 0x539   :  { %v4035_v27 = vadd.f32 %v1276_v59, %v1275_v26 }
 0x53b   :  { %3293 = vtanh.f32 %v4035_v27 }
 0x540   :  { %v3292_v30 = vpop.eup %3291 }
 0x545   :  { %v3294_v32 = vpop.eup %3293 }
 0x546   :  { %v1279_v36 = vmul.f32 %v3294_v32, %v3292_v30 }
 0x548   :  { %1345 = vmatmul.mubr.f32.vlgmr.msra.gmra.mrb[10].mxu0 %v1279_v36  ;;  %1416 = vmatmul.mubr.f32.vlgmr.msra.gmra.mrb[10].mxu1 %v1279_v36 }
 0x549   :  { %2866 = vmatpush1.bf16.msra.mxu0 %v3489_v22  ;;  %2898 = vmatpush1.bf16.msra.mxu1 %v3498_v25 }
 0x54a   :  { %2868 = vmatprep.subr.bf16.mxu0 %v3511_v29  ;;  %2900 = vmatprep.subr.bf16.mxu1 %v3527_v34 }
 0x54b   :  { %1521 = vmatprep.mubr.f32.mxu0 %v3389_v3  ;;  %1592 = vmatprep.mubr.f32.mxu1 %v3389_v3 }
 0x54d   :  { %2870 = vmatpush1.bf16.msra.mxu0 %v3529_v35  ;;  %2902 = vmatpush1.bf16.msra.mxu1 %v3539_v38 }
 0x54e   :  { %2872 = vmatprep.subr.bf16.mxu0 %v3552_v42  ;;  %2904 = vmatprep.subr.bf16.mxu1 %v3568_v47 }
 0x551   :  { %2874 = vmatpush1.bf16.msra.mxu0 %v3578_v50  ;;  %2906 = vmatpush1.bf16.msra.mxu1 %v3591_v54 }
 0x552   :  { %2876 = vmatprep.subr.bf16.mxu0 %v3604_v58  ;;  %2908 = vmatprep.subr.bf16.mxu1 %v3614_v61 }
 0x555   :  { %2878 = vmatpush1.bf16.msra.mxu0 %v3627_v1  ;;  %2910 = vmatpush1.bf16.msra.mxu1 %v3637_v5 }
 0x556   :  { %2880 = vmatprep.subr.bf16.mxu0 %v3647_v8  ;;  %2912 = vmatprep.subr.bf16.mxu1 %v3657_v11 }
 0x559   :  { %2882 = vmatpush1.bf16.msra.mxu0 %v3670_v15  ;;  %2914 = vmatpush1.bf16.msra.mxu1 %v3680_v19 }
 0x55a   :  { %2884 = vmatprep.subr.bf16.mxu0 %v3690_v24  ;;  %2916 = vmatprep.subr.bf16.mxu1 %v3700_v28 }
 0x55d   :  { %2886 = vmatpush1.bf16.msra.mxu0 %v3713_v33  ;;  %2918 = vmatpush1.bf16.msra.mxu1 %v3723_v39 }
 0x55e   :  { %2888 = vmatprep.subr.bf16.mxu0 %v3733_v43  ;;  %2920 = vmatprep.subr.bf16.mxu1 %v3743_v46 }
 0x561   :  { %2890 = vmatpush1.bf16.msra.mxu0 %v3756_v52  ;;  %2922 = vmatpush1.bf16.msra.mxu1 %v3766_v56 }
 0x562   :  { %2892 = vmatprep.subr.bf16.mxu0 %v3776_v60  ;;  %2924 = vmatprep.subr.bf16.mxu1 %v3786_v0 }
 0x565   :  { %2894 = vmatpush1.bf16.msra.mxu0 %v3793_v4  ;;  %2926 = vmatpush1.bf16.msra.mxu1 %v3797_v6 }
 0x566   :  { %2928 = vmatprep.subr.bf16.mxu0 %v3476_v17  ;;  %2960 = vmatprep.subr.bf16.mxu1 %v3487_v21 }
 0x61b   :  { %v1346_v10 = vpop.f32.mrb[10].mxu0  ;;  %v1417_v37 = vpop.f32.mrb[10].mxu1 }
 0x61c   :  { %v1347_v7 = vadd.f32 %v1346_v10, %v3849_v16  ;;  %v1418_v41 = vadd.f32 %v1417_v37, %v3851_v18  ;;  %v1348_v44 = vpop.f32.mrb[11].mxu0  ;;  %v1419_v48 = vpop.f32.mrb[11].mxu1 }
 0x61d   :  { %v1349_v51 = vadd.f32 %v1348_v44, %v3853_v20  ;;  %v1420_v31 = vadd.f32 %v1419_v48, %v3858_v45 }
 0x61e   :  { %v2397_v53 = vmul.f32 -1.442695, %v1347_v7  ;;  %v2399_v55 = vmul.f32 -1.442695, %v1418_v41 }
 0x61f   :  { %v2398_v57 = vmul.f32 -1.442695, %v1349_v51  ;;  %v2400_v63 = vmul.f32 -1.442695, %v1420_v31 }
 0x620   :  { %3295 = vpow2.f32 %v2397_v53 }
 0x621   :  { %3297 = vpow2.f32 %v2399_v55 }
 0x622   :  { %3299 = vpow2.f32 %v2398_v57 }
 0x62a   :  { %v3296_v40 = vpop.eup %3295 }
 0x62b   :  { %v3298_v62 = vpop.eup %3297  ;;  %v1438_v12 = vadd.f32 1.0, %v3296_v40 }
 0x62c   :  { %v3300_v2 = vpop.eup %3299  ;;  %v1440_v49 = vadd.f32 1.0, %v3298_v62 }
 0x62d   :  { %v1439_v9 = vadd.f32 1.0, %v3300_v2 }
 0x62e   :  { %3301 = vrcp.f32 %v1440_v49 }
 0x62f   :  { %3303 = vpow2.f32 %v2400_v63 }
 0x630   :  { %3305 = vrcp.f32 %v1439_v9 }
 0x631   :  { %3307 = vrcp.f32 %v1438_v12 }
 0x638   :  { %v3302_v14 = vpop.eup %3301 }
 0x639   :  { %v3304_v23 = vpop.eup %3303  ;;  %v1450_v59 = vmul.f32 2.0, %v3302_v14 }
 0x63a   :  { %v3306_v26 = vpop.eup %3305  ;;  %v1441_v36 = vadd.f32 1.0, %v3304_v23 }
 0x63b   :  { %v2401_v30 = vadd.f32 -1.0, %v1450_v59  ;;  %v3308_v32 = vpop.eup %3307  ;;  %v1452_v37 = vmul.f32 %v3306_v26, %v4035_v27 }
 0x63c   :  { %3309 = vrcp.f32 %v1441_v36 }
 0x63d   :  { %v1453_v10 = vmul.f32 %v3308_v32, %v2401_v30 }
 0x63f   :  { %v4077_v7 = vadd.f32 %v1453_v10, %v1452_v37 }
 0x641   :  { %3311 = vtanh.f32 %v4077_v7 }
 0x646   :  { %v3310_v41 = vpop.eup %3309 }
 0x64b   :  { %v3312_v44 = vpop.eup %3311 }
 0x64c   :  { %v1456_v48 = vmul.f32 %v3312_v44, %v3310_v41 }
 0x64e   :  { %1522 = vmatmul.mubr.f32.vlgmr.msra.gmra.mrb[12].mxu0 %v1456_v48  ;;  %1593 = vmatmul.mubr.f32.vlgmr.msra.gmra.mrb[12].mxu1 %v1456_v48 }
 0x64f   :  { %2930 = vmatpush1.bf16.msra.mxu0 %v3489_v22  ;;  %2962 = vmatpush1.bf16.msra.mxu1 %v3498_v25 }
 0x650   :  { %2932 = vmatprep.subr.bf16.mxu0 %v3511_v29  ;;  %2964 = vmatprep.subr.bf16.mxu1 %v3527_v34 }
 0x651   :  { %1698 = vmatprep.mubr.f32.mxu0 %v3389_v3  ;;  %1769 = vmatprep.mubr.f32.mxu1 %v3389_v3 }
 0x653   :  { %2934 = vmatpush1.bf16.msra.mxu0 %v3529_v35  ;;  %2966 = vmatpush1.bf16.msra.mxu1 %v3539_v38 }
 0x654   :  { %2936 = vmatprep.subr.bf16.mxu0 %v3552_v42  ;;  %2968 = vmatprep.subr.bf16.mxu1 %v3568_v47 }
 0x657   :  { %2938 = vmatpush1.bf16.msra.mxu0 %v3578_v50  ;;  %2970 = vmatpush1.bf16.msra.mxu1 %v3591_v54 }
 0x658   :  { %2940 = vmatprep.subr.bf16.mxu0 %v3604_v58  ;;  %2972 = vmatprep.subr.bf16.mxu1 %v3614_v61 }
 0x65b   :  { %2942 = vmatpush1.bf16.msra.mxu0 %v3627_v1  ;;  %2974 = vmatpush1.bf16.msra.mxu1 %v3637_v5 }
 0x65c   :  { %2944 = vmatprep.subr.bf16.mxu0 %v3647_v8  ;;  %2976 = vmatprep.subr.bf16.mxu1 %v3657_v11 }
 0x65f   :  { %2946 = vmatpush1.bf16.msra.mxu0 %v3670_v15  ;;  %2978 = vmatpush1.bf16.msra.mxu1 %v3680_v19 }
 0x660   :  { %2948 = vmatprep.subr.bf16.mxu0 %v3690_v24  ;;  %2980 = vmatprep.subr.bf16.mxu1 %v3700_v28 }
 0x663   :  { %2950 = vmatpush1.bf16.msra.mxu0 %v3713_v33  ;;  %2982 = vmatpush1.bf16.msra.mxu1 %v3723_v39 }
 0x664   :  { %2952 = vmatprep.subr.bf16.mxu0 %v3733_v43  ;;  %2984 = vmatprep.subr.bf16.mxu1 %v3743_v46 }
 0x667   :  { %2954 = vmatpush1.bf16.msra.mxu0 %v3756_v52  ;;  %2986 = vmatpush1.bf16.msra.mxu1 %v3766_v56 }
 0x668   :  { %2956 = vmatprep.subr.bf16.mxu0 %v3776_v60  ;;  %2988 = vmatprep.subr.bf16.mxu1 %v3786_v0 }
 0x66b   :  { %2958 = vmatpush1.bf16.msra.mxu0 %v3793_v4  ;;  %2990 = vmatpush1.bf16.msra.mxu1 %v3797_v6 }
 0x66c   :  { %2992 = vmatprep.subr.bf16.mxu0 %v3476_v17  ;;  %3024 = vmatprep.subr.bf16.mxu1 %v3487_v21 }
 0x721   :  { %v1523_v27 = vpop.f32.mrb[12].mxu0  ;;  %v1594_v51 = vpop.f32.mrb[12].mxu1 }
 0x722   :  { %v1524_v53 = vadd.f32 %v1523_v27, %v3849_v16  ;;  %v1595_v55 = vadd.f32 %v1594_v51, %v3851_v18  ;;  %v1525_v57 = vpop.f32.mrb[13].mxu0  ;;  %v1596_v31 = vpop.f32.mrb[13].mxu1 }
 0x723   :  { %v1526_v40 = vadd.f32 %v1525_v57, %v3853_v20  ;;  %v1597_v49 = vadd.f32 %v1596_v31, %v3858_v45 }
 0x724   :  { %v2402_v62 = vmul.f32 -1.442695, %v1524_v53  ;;  %v2404_v63 = vmul.f32 -1.442695, %v1595_v55 }
 0x725   :  { %v2403_v2 = vmul.f32 -1.442695, %v1526_v40  ;;  %v2405_v14 = vmul.f32 -1.442695, %v1597_v49 }
 0x726   :  { %3313 = vpow2.f32 %v2402_v62 }
 0x727   :  { %3315 = vpow2.f32 %v2404_v63 }
 0x728   :  { %3317 = vpow2.f32 %v2403_v2 }
 0x730   :  { %v3314_v9 = vpop.eup %3313 }
 0x731   :  { %v3316_v12 = vpop.eup %3315  ;;  %v1615_v30 = vadd.f32 1.0, %v3314_v9 }
 0x732   :  { %v3318_v23 = vpop.eup %3317  ;;  %v1617_v59 = vadd.f32 1.0, %v3316_v12 }
 0x733   :  { %v1616_v26 = vadd.f32 1.0, %v3318_v23 }
 0x734   :  { %3319 = vrcp.f32 %v1617_v59 }
 0x735   :  { %3321 = vpow2.f32 %v2405_v14 }
 0x736   :  { %3323 = vrcp.f32 %v1616_v26 }
 0x737   :  { %3325 = vrcp.f32 %v1615_v30 }
 0x73e   :  { %v3320_v32 = vpop.eup %3319 }
 0x73f   :  { %v3322_v36 = vpop.eup %3321  ;;  %v1627_v10 = vmul.f32 2.0, %v3320_v32 }
 0x740   :  { %v3324_v37 = vpop.eup %3323  ;;  %v1618_v48 = vadd.f32 1.0, %v3322_v36 }
 0x741   :  { %v2406_v41 = vadd.f32 -1.0, %v1627_v10  ;;  %v3326_v44 = vpop.eup %3325  ;;  %v1629_v51 = vmul.f32 %v3324_v37, %v4077_v7 }
 0x742   :  { %3327 = vrcp.f32 %v1618_v48 }
 0x743   :  { %v1630_v27 = vmul.f32 %v3326_v44, %v2406_v41 }
 0x745   :  { %v4119_v53 = vadd.f32 %v1630_v27, %v1629_v51 }
 0x747   :  { %3329 = vtanh.f32 %v4119_v53 }
 0x74c   :  { %v3328_v55 = vpop.eup %3327 }
 0x751   :  { %v3330_v57 = vpop.eup %3329 }
 0x752   :  { %v1633_v31 = vmul.f32 %v3330_v57, %v3328_v55 }
 0x754   :  { %1699 = vmatmul.mubr.f32.vlgmr.msra.gmra.mrb[14].mxu0 %v1633_v31  ;;  %1770 = vmatmul.mubr.f32.vlgmr.msra.gmra.mrb[14].mxu1 %v1633_v31 }
 0x755   :  { %2994 = vmatpush1.bf16.msra.mxu0 %v3489_v22  ;;  %3026 = vmatpush1.bf16.msra.mxu1 %v3498_v25 }
 0x756   :  { %2996 = vmatprep.subr.bf16.mxu0 %v3511_v29  ;;  %3028 = vmatprep.subr.bf16.mxu1 %v3527_v34 }
 0x757   :  { %1875 = vmatprep.mubr.f32.mxu0 %v3389_v3  ;;  %1946 = vmatprep.mubr.f32.mxu1 %v3389_v3 }
 0x759   :  { %2998 = vmatpush1.bf16.msra.mxu0 %v3529_v35  ;;  %3030 = vmatpush1.bf16.msra.mxu1 %v3539_v38 }
 0x75a   :  { %3000 = vmatprep.subr.bf16.mxu0 %v3552_v42  ;;  %3032 = vmatprep.subr.bf16.mxu1 %v3568_v47 }
 0x75d   :  { %3002 = vmatpush1.bf16.msra.mxu0 %v3578_v50  ;;  %3034 = vmatpush1.bf16.msra.mxu1 %v3591_v54 }
 0x75e   :  { %3004 = vmatprep.subr.bf16.mxu0 %v3604_v58  ;;  %3036 = vmatprep.subr.bf16.mxu1 %v3614_v61 }
 0x761   :  { %3006 = vmatpush1.bf16.msra.mxu0 %v3627_v1  ;;  %3038 = vmatpush1.bf16.msra.mxu1 %v3637_v5 }
 0x762   :  { %3008 = vmatprep.subr.bf16.mxu0 %v3647_v8  ;;  %3040 = vmatprep.subr.bf16.mxu1 %v3657_v11 }
 0x765   :  { %3010 = vmatpush1.bf16.msra.mxu0 %v3670_v15  ;;  %3042 = vmatpush1.bf16.msra.mxu1 %v3680_v19 }
 0x766   :  { %3012 = vmatprep.subr.bf16.mxu0 %v3690_v24  ;;  %3044 = vmatprep.subr.bf16.mxu1 %v3700_v28 }
 0x769   :  { %3014 = vmatpush1.bf16.msra.mxu0 %v3713_v33  ;;  %3046 = vmatpush1.bf16.msra.mxu1 %v3723_v39 }
 0x76a   :  { %3016 = vmatprep.subr.bf16.mxu0 %v3733_v43  ;;  %3048 = vmatprep.subr.bf16.mxu1 %v3743_v46 }
 0x76d   :  { %3018 = vmatpush1.bf16.msra.mxu0 %v3756_v52  ;;  %3050 = vmatpush1.bf16.msra.mxu1 %v3766_v56 }
 0x76e   :  { %3020 = vmatprep.subr.bf16.mxu0 %v3776_v60  ;;  %3052 = vmatprep.subr.bf16.mxu1 %v3786_v0 }
 0x771   :  { %3022 = vmatpush1.bf16.msra.mxu0 %v3793_v4  ;;  %3054 = vmatpush1.bf16.msra.mxu1 %v3797_v6 }
 0x772   :  { %3056 = vmatprep.subr.bf16.mxu0 %v3476_v17  ;;  %3088 = vmatprep.subr.bf16.mxu1 %v3487_v21 }
 0x827   :  { %v1700_v7 = vpop.f32.mrb[14].mxu0  ;;  %v1771_v40 = vpop.f32.mrb[14].mxu1 }
 0x828   :  { %v1701_v62 = vadd.f32 %v1700_v7, %v3849_v16  ;;  %v1772_v63 = vadd.f32 %v1771_v40, %v3851_v18  ;;  %v1702_v2 = vpop.f32.mrb[15].mxu0  ;;  %v1773_v49 = vpop.f32.mrb[15].mxu1 }
 0x829   :  { %v1703_v9 = vadd.f32 %v1702_v2, %v3853_v20  ;;  %v1774_v17 = vadd.f32 %v1773_v49, %v3858_v45 }
 0x82a   :  { %v2407_v12 = vmul.f32 -1.442695, %v1701_v62  ;;  %v2409_v14 = vmul.f32 -1.442695, %v1772_v63 }
 0x82b   :  { %v2408_v23 = vmul.f32 -1.442695, %v1703_v9  ;;  %v2410_v26 = vmul.f32 -1.442695, %v1774_v17  ;;  %v2167_v17 = vld [vmem:[%s4288_s4 + $0x10] sm:$0xff] }
 0x82c   :  { %3331 = vpow2.f32 %v2407_v12  ;;  %v3390_v12 = vmov 0.0|0.0  }
 0x82d   :  { %3333 = vpow2.f32 %v2409_v14  ;;  %v2165_v14 = vld [vmem:[%s4288_s4] sm:$0xff] }
 0x82e   :  { %3335 = vpow2.f32 %v2408_v23  ;;  %v2166_v23 = vld [vmem:[%s4288_s4 + $0x8] sm:$0xff] }
 0x836   :  { %v3332_v59 = vpop.eup %3331 }
 0x837   :  { %v3334_v21 = vpop.eup %3333  ;;  %v1792_v10 = vadd.f32 1.0, %v3332_v59  ;;  %v3120_v59 = vpack.c.bf16 %v2166_v23, %v2165_v14 }
 0x838   :  { %v3336_v30 = vpop.eup %3335  ;;  %v1794_v32 = vadd.f32 1.0, %v3334_v21  ;;  %v2168_v21 = vld [vmem:[%s4288_s4 + $0x18] sm:$0xff] }
 0x839   :  { %v1793_v36 = vadd.f32 1.0, %v3336_v30 }
 0x83a   :  { %3337 = vrcp.f32 %v1794_v32 }
 0x83b   :  { %3339 = vpow2.f32 %v2410_v26  ;;  %v3123_v26 = vpack.c.bf16 %v2168_v21, %v2167_v17 }
 0x83c   :  { %3341 = vrcp.f32 %v1793_v36 }
 0x83d   :  { %3343 = vrcp.f32 %v1792_v10 }
 0x844   :  { %v3338_v37 = vpop.eup %3337 }
 0x845   :  { %v3340_v41 = vpop.eup %3339  ;;  %v1804_v44 = vmul.f32 2.0, %v3338_v37 }
 0x846   :  { %v3342_v48 = vpop.eup %3341  ;;  %v1795_v55 = vadd.f32 1.0, %v3340_v41 }
 0x847   :  { %v2411_v27 = vadd.f32 -1.0, %v1804_v44  ;;  %v3344_v51 = vpop.eup %3343  ;;  %v1806_v31 = vmul.f32 %v3342_v48, %v4119_v53 }
 0x848   :  { %3345 = vrcp.f32 %v1795_v55 }
 0x849   :  { %v1807_v57 = vmul.f32 %v3344_v51, %v2411_v27 }
 0x84b   :  { %v4161_v7 = vadd.f32 %v1807_v57, %v1806_v31 }
 0x84d   :  { %3347 = vtanh.f32 %v4161_v7 }
 0x852   :  { %v3346_v40 = vpop.eup %3345 }
 0x857   :  { %v3348_v62 = vpop.eup %3347 }
 0x858   :  { %v4164_v63 = vmul.f32 %v3348_v62, %v3346_v40 }
 0x85a   :  { %1876 = vmatmul.mubr.f32.vlgmr.msra.gmra.mrb[16].mxu0 %v4164_v63  ;;  %1947 = vmatmul.mubr.f32.vlgmr.msra.gmra.mrb[16].mxu1 %v4164_v63 }
 0x85b   :  { %3058 = vmatpush1.bf16.msra.mxu0 %v3489_v22  ;;  %3090 = vmatpush1.bf16.msra.mxu1 %v3498_v25 }
 0x85c   :  { %3060 = vmatprep.subr.bf16.mxu0 %v3511_v29  ;;  %3092 = vmatprep.subr.bf16.mxu1 %v3527_v34 }
 0x85d   :  { %2053 = vmatprep.mubr.f32.mxu0 %v3389_v3  ;;  %2124 = vmatprep.mubr.f32.mxu1 %v3389_v3 }
 0x85f   :  { %3062 = vmatpush1.bf16.msra.mxu0 %v3529_v35  ;;  %3094 = vmatpush1.bf16.msra.mxu1 %v3539_v38 }
 0x860   :  { %3064 = vmatprep.subr.bf16.mxu0 %v3552_v42  ;;  %3096 = vmatprep.subr.bf16.mxu1 %v3568_v47 }
 0x863   :  { %3066 = vmatpush1.bf16.msra.mxu0 %v3578_v50  ;;  %3098 = vmatpush1.bf16.msra.mxu1 %v3591_v54 }
 0x864   :  { %3068 = vmatprep.subr.bf16.mxu0 %v3604_v58  ;;  %3100 = vmatprep.subr.bf16.mxu1 %v3614_v61 }
 0x867   :  { %3070 = vmatpush1.bf16.msra.mxu0 %v3627_v1  ;;  %3102 = vmatpush1.bf16.msra.mxu1 %v3637_v5 }
 0x868   :  { %3072 = vmatprep.subr.bf16.mxu0 %v3647_v8  ;;  %3104 = vmatprep.subr.bf16.mxu1 %v3657_v11 }
 0x86b   :  { %3074 = vmatpush1.bf16.msra.mxu0 %v3670_v15  ;;  %3106 = vmatpush1.bf16.msra.mxu1 %v3680_v19 }
 0x86c   :  { %3076 = vmatprep.subr.bf16.mxu0 %v3690_v24  ;;  %3108 = vmatprep.subr.bf16.mxu1 %v3700_v28 }
 0x86f   :  { %3078 = vmatpush1.bf16.msra.mxu0 %v3713_v33  ;;  %3110 = vmatpush1.bf16.msra.mxu1 %v3723_v39 }
 0x870   :  { %3080 = vmatprep.subr.bf16.mxu0 %v3733_v43  ;;  %3112 = vmatprep.subr.bf16.mxu1 %v3743_v46 }
 0x873   :  { %3082 = vmatpush1.bf16.msra.mxu0 %v3756_v52  ;;  %3114 = vmatpush1.bf16.msra.mxu1 %v3766_v56 }
 0x874   :  { %3084 = vmatprep.subr.bf16.mxu0 %v3776_v60  ;;  %3116 = vmatprep.subr.bf16.mxu1 %v3786_v0 }
 0x877   :  { %3086 = vmatpush1.bf16.msra.mxu0 %v3793_v4  ;;  %3118 = vmatpush1.bf16.msra.mxu1 %v3797_v6 }
 0x878   :  { %3119 = vmatprep.subr.bf16.mxu0 %v3390_v12  ;;  %3125 = vmatprep.subr.bf16.mxu1 %v3390_v12 }
 0x92d   :  { %v1877_v22 = vpop.f32.mrb[16].mxu0  ;;  %v1948_v25 = vpop.f32.mrb[16].mxu1 }
 0x92e   :  { %v1878_v29 = vadd.f32 %v1877_v22, %v3849_v16  ;;  %v1949_v34 = vadd.f32 %v1948_v25, %v3851_v18  ;;  %v1879_v35 = vpop.f32.mrb[17].mxu0  ;;  %v1950_v38 = vpop.f32.mrb[17].mxu1 }
 0x92f   :  { %v1880_v42 = vadd.f32 %v1879_v35, %v3853_v20  ;;  %v1951_v58 = vadd.f32 %v1950_v38, %v3858_v45 }
 0x930   :  { %v2412_v47 = vmul.f32 -1.442695, %v1878_v29  ;;  %v2414_v50 = vmul.f32 -1.442695, %v1949_v34 }
 0x931   :  { %v2413_v54 = vmul.f32 -1.442695, %v1880_v42  ;;  %v2415_v5 = vmul.f32 -1.442695, %v1951_v58 }
 0x932   :  { %3349 = vpow2.f32 %v2412_v47  ;;  %v2253_v47 = vld [vmem:[%s4289_s6] sm:$0xff] }
 0x933   :  { %3351 = vpow2.f32 %v2414_v50  ;;  %v2254_v50 = vld [vmem:[%s4289_s6 + $0x8] sm:$0xff] }
 0x934   :  { %3353 = vpow2.f32 %v2413_v54  ;;  %v2255_v54 = vld [vmem:[%s4289_s6 + $0x10] sm:$0xff]  ;;  %v3126_v58 = vpack.c.bf16 %v2254_v50, %v2253_v47 }
 0x93c   :  { %v3350_v61 = vpop.eup %3349 }
 0x93d   :  { %v3352_v1 = vpop.eup %3351  ;;  %v1965_v19 = vadd.f32 1.0, %v3350_v61  ;;  %v2256_v61 = vld [vmem:[%s4289_s6 + $0x18] sm:$0xff] }
 0x93e   :  { %v3354_v8 = vpop.eup %3353  ;;  %v1967_v11 = vadd.f32 1.0, %v3352_v1  ;;  %v3129_v1 = vpack.c.bf16 %v2256_v61, %v2255_v54 }
 0x93f   :  { %v1966_v15 = vadd.f32 1.0, %v3354_v8 }
 0x940   :  { %3355 = vrcp.f32 %v1967_v11 }
 0x941   :  { %3357 = vpow2.f32 %v2415_v5  ;;  %v2258_v5 = vld [vmem:[%s4289_s6 + $0x28] sm:$0xff] }
 0x942   :  { %3359 = vrcp.f32 %v1966_v15 }
 0x943   :  { %3361 = vrcp.f32 %v1965_v19 }
 0x94a   :  { %v3356_v24 = vpop.eup %3355 }
 0x94b   :  { %v3358_v28 = vpop.eup %3357  ;;  %v1977_v33 = vmul.f32 2.0, %v3356_v24 }
 0x94c   :  { %v3360_v39 = vpop.eup %3359  ;;  %v1968_v52 = vadd.f32 1.0, %v3358_v28 }
 0x94d   :  { %v2416_v43 = vadd.f32 -1.0, %v1977_v33  ;;  %v3362_v46 = vpop.eup %3361  ;;  %v1979_v60 = vmul.f32 %v3360_v39, %v4161_v7  ;;  %v2259_v33 = vld [vmem:[%s4289_s6 + $0x30] sm:$0xff] }
 0x94e   :  { %3363 = vrcp.f32 %v1968_v52  ;;  %v3135_v39 = vpack.c.bf16 %v2260_v13, %v2259_v33 }
 0x94f   :  { %v1980_v56 = vmul.f32 %v3362_v46, %v2416_v43  ;;  %v13_v43 = vstv %s4290_s7  ;;  %v2422_v46 = vld [vmem:[%s4291_s5] ss:$0 sm:$0xff] }
 0x950   :  { %14 = vst [vmem:[#allocation2] sm:$0x1] %v13_v43 }
 0x951   :  { %v1981_v4 = vadd.f32 %v1980_v56, %v1979_v60 }
 0x953   :  { %3365 = vtanh.f32 %v1981_v4  ;;  %v1988_v6 = vsel %vm4209_vm5, %v1981_v4, %v4161_v7 }
 0x957   :  { %v2424_v4 = vld [vmem:[#allocation2] ss:$0 sm:$0xff] }
 0x958   :  { %v3364_v53 = vpop.eup %3363 }
 0x95d   :  { %v3366_v2 = vpop.eup %3365 }
 0x95e   :  { %v1983_v49 = vmul.f32 %v3366_v2, %v3364_v53 }
 0x960   :  { %v4219_v9 = vsel %vm4209_vm5, %v1983_v49, %v4164_v63 }
 0x961   :  { %2054 = vmatmul.mubr.f32.vlgmr.msra.gmra.mrb[18].mxu0 %v4219_v9  ;;  %2125 = vmatmul.mubr.f32.vlgmr.msra.gmra.mrb[18].mxu1 %v4219_v9 }
 0x962   :  { %3121 = vmatpush3.bf16.msra.mxu0 %v3120_v59  ;;  %2449 = vmatprep.mubr.msk.f32.mxu0 %vm3391_vm6, %v3389_v3 }
 0x963   :  { %3122 = vmatprep.subr.bf16.mxu0 %v3390_v12  ;;  %2468 = vmatprep.mubr.msk.f32.mxu1 %vm3391_vm6, %v3389_v3  ;;  %v2257_v3 = vld [vmem:[%s4289_s6 + $0x20] sm:$0xff] }
 0x964   :  { %3127 = vmatpush3.bf16.msra.mxu1 %v3126_v58  ;;  %v3132_v11 = vpack.c.bf16 %v2258_v5, %v2257_v3 }
 0x965   :  { %3128 = vmatprep.subr.bf16.mxu1 %v3390_v12 }
 0x966   :  { %3124 = vmatpush3.bf16.msra.mxu0 %v3123_v26 }
 0x968   :  { %3130 = vmatpush3.bf16.msra.mxu1 %v3129_v1 }
 0x969   :  { %3131 = vmatprep.subr.bf16.mxu1 %v3390_v12 }
 0x96c   :  { %3133 = vmatpush3.bf16.msra.mxu1 %v3132_v11 }
 0x96d   :  { %3134 = vmatprep.subr.bf16.mxu1 %v3390_v12 }
 0x970   :  { %3136 = vmatpush3.bf16.msra.mxu1 %v3135_v39 }
 0xa34   :  { %v2055_v30 = vpop.f32.mrb[18].mxu0  ;;  %v2126_v32 = vpop.f32.mrb[18].mxu1 }
 0xa35   :  { %v2056_v36 = vadd.f32 %v2055_v30, %v3849_v16  ;;  %v2127_v10 = vadd.f32 %v2126_v32, %v3851_v18  ;;  %v2057_v37 = vpop.f32.mrb[19].mxu0  ;;  %v2128_v41 = vpop.f32.mrb[19].mxu1 }
 0xa36   :  { %v2058_v44 = vadd.f32 %v2057_v37, %v3853_v20  ;;  %v2129_v55 = vadd.f32 %v2128_v41, %v3858_v45 }
 0xa37   :  { %v2417_v48 = vmul.f32 -1.442695, %v2056_v36  ;;  %v2419_v27 = vmul.f32 -1.442695, %v2127_v10 }
 0xa38   :  { %v2418_v51 = vmul.f32 -1.442695, %v2058_v44  ;;  %v2420_v57 = vmul.f32 -1.442695, %v2129_v55 }
 0xa39   :  { %3367 = vpow2.f32 %v2417_v48 }
 0xa3a   :  { %3369 = vpow2.f32 %v2419_v27 }
 0xa3b   :  { %3371 = vpow2.f32 %v2418_v51 }
 0xa3c   :  { %3373 = vpow2.f32 %v2420_v57 }
 0xa43   :  { %v3368_v31 = vpop.eup %3367 }
 0xa44   :  { %v3370_v7 = vpop.eup %3369  ;;  %v2143_v18 = vadd.f32 1.0, %v3368_v31 }
 0xa45   :  { %v3372_v40 = vpop.eup %3371  ;;  %v2145_v62 = vadd.f32 1.0, %v3370_v7 }
 0xa46   :  { %v2144_v16 = vadd.f32 1.0, %v3372_v40  ;;  %v3374_v20 = vpop.eup %3373 }
 0xa47   :  { %3375 = vrcp.f32 %v2145_v62  ;;  %v2146_v38 = vadd.f32 1.0, %v3374_v20 }
 0xa48   :  { %3377 = vrcp.f32 %v2144_v16 }
 0xa49   :  { %3379 = vrcp.f32 %v2143_v18 }
 0xa4a   :  { %3381 = vrcp.f32 %v2146_v38 }
 0xa51   :  { %v3376_v63 = vpop.eup %3375 }
 0xa52   :  { %v3378_v22 = vpop.eup %3377  ;;  %v2155_v25 = vmul.f32 2.0, %v3376_v63 }
 0xa53   :  { %v2157_v29 = vmul.f32 %v3378_v22, %v1988_v6  ;;  %v3380_v35 = vpop.eup %3379 }
 0xa54   :  { %v2421_v34 = vadd.f32 -1.0, %v2155_v25  ;;  %v3382_v8 = vpop.eup %3381 }
 0xa56   :  { %v2158_v45 = vmul.f32 %v3380_v35, %v2421_v34 }
 0xa58   :  { %v2159_v42 = vadd.f32 %v2158_v45, %v2157_v29 }
 0xa5a   :  { %3383 = vtanh.f32 %v2159_v42 }
 0xa64   :  { %v3384_v15 = vpop.eup %3383 }
 0xa65   :  { %v2161_v19 = vmul.f32 %v3384_v15, %v3382_v8 }
 0xa67   :  { %v2164_v24 = vsel %vm2163_vm8, %v2161_v19, %v4219_v9 }
 0xa68   :  { %2177 = vrot.lane.b32.xlu0 %v2164_v24, %s3392_s22 }
 0xada   :  { %v2178_v28 = vpop.permute.xlu0 %2177 }
 0xadb   :  { %2450 = vmatmul.mubr.msk.f32.vlgmr.msra.gmra.mrb[20].mxu0 %vm2179_vm9, %v2178_v28 }
 0xbae   :  { %v2248_v52 = vpop.f32.mrb[20].mxu0 }
 0xbaf   :  { %v2249_v56 = vadd.f32 %v2422_v46, %v2248_v52  ;;  %v2451_v60 = vpop.f32.mrb[21].mxu0 }
 0xbb1   :  { %v2252_v0 = vmax.f32 %v2249_v56, 0.0 }
 0xbb3   :  { %2469 = vmatmul.mubr.msk.f32.vlgmr.msra.gmra.mrb[20].mxu1 %vm2268_vm10, %v2252_v0 }
 0xc86   :  { %v2338_v6 = vpop.f32.mrb[20].mxu1 }
 0xc87   :  { %v2339_v53 = vadd.f32 %v2424_v4, %v2338_v6  ;;  %v2470_v2 = vpop.f32.mrb[21].mxu1 }
 0xc89   :  { %v2426_v49 = vmul.f32 -1.442695, %v2339_v53 }
 0xc8b   :  { %3385 = vpow2.f32 %v2426_v49 }
 0xc95   :  { %v3386_v9 = vpop.eup %3385 }
 0xc96   :  { %v2345_v12 = vadd.f32 1.0, %v3386_v9 }
 0xc98   :  { %3387 = vrcp.f32 %v2345_v12 }
 0xca2   :  { %v3388_v14 = vpop.eup %3387 }
 0xca3   :  { %2349 = vst.msk [vmem:[%s4292_s8] sm:$0xff] %vm2348_vm11, %v3388_v14 }

</bundles_post_ra>
